<compile_context>
chip_gen: v6e
topology: v6e:2x2x1
jax: 0.10.0
libtpu: 0.0.40
codegen_flags: <defaults>
</compile_context>

<pallas_src>
import numpy as np
import jax
import jax.numpy as jnp
from jax.experimental import pallas as pl
from jax.experimental.pallas import tpu as pltpu

# ----------------------------- config -----------------------------
BERT_HIDDEN = 32
HIDDEN = 16
IN_DIM = BERT_HIDDEN + HIDDEN          # 48 (== args.bert_hidden_dim + args.hidden_dim)
NHEAD = 4                              # args.attn_head
DHEAD = IN_DIM // NHEAD                # 12
DIM_FF = HIDDEN                        # dim_feedforward = args.hidden_dim
LN_EPS = 1e-5
NEG_INF = -1e9
SLAB_W = 3 * IN_DIM                    # 144: width of the packed parameter slabs


# ---------- kernel 1: masked sum -> dense, fused with pooler concat ----------
def _inner_node_kernel(x_ref, len_ref, pool_ref, w_ref, b_ref, out_ref):
    # x: (TN, S, Hb)  len: (TN, 1) int32  pool: (TN, Hb)  w: (Hb, H)  b: (1, H)
    # out: (TN, H + Hb) == [ dense(masked x).sum(seq) | pooler ]
    TN, S, _ = x_ref.shape
    lens = len_ref[...]                                              # (TN, 1)
    pos = jax.lax.broadcasted_iota(jnp.int32, (TN, S), 1)
    valid = (pos < lens).astype(jnp.float32)[:, :, None]             # (TN, S, 1)
    xm_sum = jnp.sum(x_ref[...] * valid, axis=1)                     # (TN, Hb)
    # dense applied per position then summed == (sum of masked x) @ W + S*b
    node = jnp.dot(xm_sum, w_ref[...],
                   preferred_element_type=jnp.float32) + jnp.float32(S) * b_ref[...]
    out_ref[...] = jnp.concatenate([node, pool_ref[...]], axis=-1)   # (TN, H+Hb)


def inner_node_features(bert_out, aa_len, pooler, w, b, *, tile_n=8):
    n, S, Hb = bert_out.shape
    n_pad = ((n + tile_n - 1) // tile_n) * tile_n
    lens = aa_len.reshape(-1, 1).astype(jnp.int32)
    if n_pad != n:
        p = n_pad - n
        bert_out = jnp.pad(bert_out, ((0, p), (0, 0), (0, 0)))
        lens = jnp.pad(lens, ((0, p), (0, 0)))
        pooler = jnp.pad(pooler, ((0, p), (0, 0)))
    out = pl.pallas_call(
        _inner_node_kernel,
        out_shape=jax.ShapeDtypeStruct((n_pad, HIDDEN + BERT_HIDDEN), jnp.float32),
        grid_spec=pltpu.PrefetchScalarGridSpec(
            num_scalar_prefetch=0,
            grid=(n_pad // tile_n,),
            in_specs=[
                pl.BlockSpec((tile_n, S, Hb), lambda i: (i, 0, 0)),
                pl.BlockSpec((tile_n, 1), lambda i: (i, 0)),
                pl.BlockSpec((tile_n, Hb), lambda i: (i, 0)),
                pl.BlockSpec((Hb, HIDDEN), lambda i: (0, 0)),
                pl.BlockSpec((1, HIDDEN), lambda i: (0, 0)),
            ],
            out_specs=pl.BlockSpec((tile_n, HIDDEN + BERT_HIDDEN), lambda i: (i, 0)),
        ),
        compiler_params=pltpu.CompilerParams(dimension_semantics=("parallel",)),
    )(bert_out, lens, pooler, w, b)
    return out[:n]


# ---------- kernel 2: per-graph fwd+bwd graph-masked transformer encoder ----------
def _graph_encoder_kernel(len_ref, x_ref, g_ref, w_ref, vec_ref, out_ref):
    # len: (B,) int32 in SMEM (scalar prefetch)
    # x: (1, L, D) graph node features    g: (1, L, L) adjacency (float)
    # w: (3D + FF, 3D) packed weights     vec: (8, 3D) packed biases / LN
    b = pl.program_id(0)
    x = x_ref[0]                                            # (L, D)
    g = g_ref[0]                                            # (L, L)
    L = x.shape[0]
    D = IN_DIM

    # ----- attention bias generated in-kernel (fwd = adjacency, bwd = adj^T) -----
    length = len_ref[b]
    col = jax.lax.broadcasted_iota(jnp.int32, (L, L), 1)
    key_valid = col < length                                # key-padding mask
    bias_f = jnp.where((g != 0.0) & key_valid, 0.0, NEG_INF).astype(jnp.float32)
    bias_b = jnp.where((g.T != 0.0) & key_valid, 0.0, NEG_INF).astype(jnp.float32)

    # ----- packed parameter slabs (static slices, zero-cost views) -----
    w_qkv = w_ref[0:D, :]                                   # (48, 144)
    w_o = w_ref[D:2 * D, 0:D]                               # (48, 48)
    w_ff1 = w_ref[2 * D:3 * D, 0:DIM_FF]                    # (48, 16)
    w_ff2 = w_ref[3 * D:3 * D + DIM_FF, 0:D]                # (16, 48)
    b_qkv = vec_ref[0:1, :]                                 # (1, 144)
    b_o = vec_ref[1:2, 0:D]
    b_ff1 = vec_ref[2:3, 0:DIM_FF]
    b_ff2 = vec_ref[3:4, 0:D]
    ln1_g = vec_ref[4:5, 0:D]
    ln1_b = vec_ref[5:6, 0:D]
    ln2_g = vec_ref[6:7, 0:D]
    ln2_b = vec_ref[7:8, 0:D]

    # ----- fused Q/K/V projection: one lane-dense (L,48)x(48,144) matmul -----
    qkv = jnp.dot(x, w_qkv, preferred_element_type=jnp.float32) + b_qkv
    scale = jnp.float32(1.0 / np.sqrt(DHEAD))
    q = qkv[:, 0:D] * scale                                 # scale q once, not scores
    k = qkv[:, D:2 * D]
    v = qkv[:, 2 * D:3 * D]

    ctx_f = []
    ctx_b = []
    for h in range(NHEAD):                                  # tiny static unroll
        qh = q[:, h * DHEAD:(h + 1) * DHEAD]
        kh = k[:, h * DHEAD:(h + 1) * DHEAD]
        vh = v[:, h * DHEAD:(h + 1) * DHEAD]
        # contract the dhead axis directly: no kh.T transpose
        raw = jax.lax.dot_general(qh, kh, (((1,), (1,)), ((), ())),
                                  preferred_element_type=jnp.float32)   # (L, L)
        pf = jax.nn.softmax(raw + bias_f, axis=-1)
        pb = jax.nn.softmax(raw + bias_b, axis=-1)
        ctx_f.append(jnp.dot(pf, vh, preferred_element_type=jnp.float32))
        ctx_b.append(jnp.dot(pb, vh, preferred_element_type=jnp.float32))

    # lane-pack per-head contexts, stack fwd/bwd along sublanes -> ONE out-proj
    ctx2 = jnp.concatenate([jnp.concatenate(ctx_f, axis=-1),
                            jnp.concatenate(ctx_b, axis=-1)], axis=0)   # (2L, 48)
    attn2 = jnp.dot(ctx2, w_o, preferred_element_type=jnp.float32) + b_o

    def layer_norm(y, gg, bb):
        mu = jnp.mean(y, axis=-1, keepdims=True)
        var = jnp.mean((y - mu) ** 2, axis=-1, keepdims=True)
        return (y - mu) * jax.lax.rsqrt(var + LN_EPS) * gg + bb

    x2 = jnp.concatenate([x, x], axis=0)                                # (2L, 48)
    x1 = layer_norm(x2 + attn2, ln1_g, ln1_b)
    hidden = jax.nn.relu(
        jnp.dot(x1, w_ff1, preferred_element_type=jnp.float32) + b_ff1)
    ff = jnp.dot(hidden, w_ff2, preferred_element_type=jnp.float32) + b_ff2
    y2 = layer_norm(x1 + ff, ln2_g, ln2_b)                              # (2L, 48)

    # mutual_influence = forward_ + backward_
    out_ref[0] = y2[0:L, :] + y2[L:2 * L, :]


def graph_encoder(graph_in, aa_graph, aa_graph_length, w_slab, vec_slab):
    B, L, D = graph_in.shape
    return pl.pallas_call(
        _graph_encoder_kernel,
        out_shape=jax.ShapeDtypeStruct((B, L, D), jnp.float32),
        grid_spec=pltpu.PrefetchScalarGridSpec(
            num_scalar_prefetch=1,
            grid=(B,),
            in_specs=[
                pl.BlockSpec((1, L, D), lambda b, ln: (b, 0, 0)),
                pl.BlockSpec((1, L, L), lambda b, ln: (b, 0, 0)),
                pl.BlockSpec(w_slab.shape, lambda b, ln: (0, 0)),   # fetched once
                pl.BlockSpec(vec_slab.shape, lambda b, ln: (0, 0)),  # fetched once
            ],
            out_specs=pl.BlockSpec((1, L, D), lambda b, ln: (b, 0, 0)),
        ),
        compiler_params=pltpu.CompilerParams(dimension_semantics=("parallel",)),
    )(aa_graph_length.astype(jnp.int32), graph_in, aa_graph.astype(jnp.float32),
      w_slab, vec_slab)


# ----------------------------- parameters -----------------------------
def init_params(key):
    ks = jax.random.split(key, 6)

    def rnd(k, shape):
        fan_in = shape[0]
        return jax.random.normal(k, shape, jnp.float32) / np.sqrt(fan_in)

    # encoder weights packed into one slab: [ w_qkv | w_o | w_ff1 | w_ff2 ]
    w_qkv = rnd(ks[1], (IN_DIM, 3 * IN_DIM))
    w_o = rnd(ks[2], (IN_DIM, IN_DIM))
    w_ff1 = rnd(ks[3], (IN_DIM, DIM_FF))
    w_ff2 = rnd(ks[4], (DIM_FF, IN_DIM))
    w_slab = jnp.zeros((3 * IN_DIM + DIM_FF, SLAB_W), jnp.float32)
    w_slab = w_slab.at[0:IN_DIM, :].set(w_qkv)
    w_slab = w_slab.at[IN_DIM:2 * IN_DIM, 0:IN_DIM].set(w_o)
    w_slab = w_slab.at[2 * IN_DIM:3 * IN_DIM, 0:DIM_FF].set(w_ff1)
    w_slab = w_slab.at[3 * IN_DIM:3 * IN_DIM + DIM_FF, 0:IN_DIM].set(w_ff2)

    # biases / LN vectors packed into one (8, 144) slab
    # rows: 0 b_qkv, 1 b_o, 2 b_ff1, 3 b_ff2, 4 ln1_g, 5 ln1_b, 6 ln2_g, 7 ln2_b
    vec_slab = jnp.zeros((8, SLAB_W), jnp.float32)
    vec_slab = vec_slab.at[4, 0:IN_DIM].set(1.0)   # ln1_gamma
    vec_slab = vec_slab.at[6, 0:IN_DIM].set(1.0)   # ln2_gamma

    return dict(
        dense_w=rnd(ks[0], (BERT_HIDDEN, HIDDEN)),   # nn.Linear(bert_hidden, hidden)
        dense_b=jnp.zeros((1, HIDDEN), jnp.float32),
        w_slab=w_slab,
        vec_slab=vec_slab,
    )


# ----------------------------- forward (glue + kernels) -----------------------------
def inter_context_forward(params, as_features, inputs, *,
                          max_inner_len, num_graphs, graph_len):
    (bert_last_hidden, bert_pooler, aa_len, map_AA, map_AA_idx,
     map_AS, map_AS_idx, aa_graph_length, aa_graph) = inputs
    S, B, L = max_inner_len, num_graphs, graph_len        # static -> jittable

    # --- forward_bert_inner (BERT itself is an external encoder; see TODO) ---
    bert_out = bert_last_hidden[:, 1:S + 1, :]             # drop CLS, keep max_len
    rela_v_inner = inner_node_features(bert_out, aa_len, bert_pooler,
                                       params['dense_w'], params['dense_b'])  # (N_AA, 48)

    # --- con_aspect_graph: build graph node features ---
    graph_in = jnp.zeros((B, L, IN_DIM), jnp.float32)
    graph_in = graph_in.at[map_AA, map_AA_idx].set(rela_v_inner)
    graph_in = graph_in.at[map_AS, map_AS_idx].set(as_features)    # overwrites, as in PyTorch

    # aspect_graph_encoder_version == 1: fwd + bwd passes fused per graph
    mutual = graph_encoder(graph_in, aa_graph, aa_graph_length,
                           params['w_slab'], params['vec_slab'])   # (B, L, 48)

    # gather + need_change blend + residual: tiny elementwise tail, left to XLA fusion
    AA_features = mutual[map_AS, map_AS_idx]                       # (N_AS, 48)
    need = (aa_graph_length[map_AS] > 1).astype(jnp.float32)[:, None]
    blended = AA_features * need + as_features * (1.0 - need)
    return blended + as_features                                   # fusion_features


# ----------------------------- demo -----------------------------
if __name__ == "__main__":
    key = jax.random.PRNGKey(0)
    kp, k1, k2, k3, k4 = jax.random.split(key, 5)
    params = init_params(kp)

    N_AA, N_AS = 4, 4
    S_TOTAL = 8             # raw bert sequence length (incl. CLS)
    B, L = 2, 4

    # precomputed "context_encoder" outputs standing in for BERT
    bert_last_hidden = jax.random.normal(k1, (N_AA, S_TOTAL, BERT_HIDDEN), jnp.float32)
    bert_pooler = jax.random.normal(k2, (N_AA, BERT_HIDDEN), jnp.float32)
    aa_len_np = np.array([3, 5, 4, 2], np.int32)                  # inner lengths (max 5)
    aa_len = jnp.asarray(aa_len_np)

    as_features = jax.random.normal(k3, (N_AS, IN_DIM), jnp.float32)
    map_AA = jnp.array([0, 0, 1, 1], jnp.int32)
    map_AA_idx = jnp.array([2, 3, 2, 3], jnp.int32)
    map_AS = jnp.array([0, 0, 1, 1], jnp.int32)
    map_AS_idx = jnp.array([0, 1, 0, 1], jnp.int32)
    aa_graph_length = jnp.array([4, 1], jnp.int32)                # 2nd graph triggers ~need_change
    adj = (jax.random.uniform(k4, (B, L, L)) > 0.5).astype(jnp.float32)
    aa_graph = jnp.maximum(adj, jnp.eye(L, dtype=jnp.float32)[None])   # self loops

    inputs = (bert_last_hidden, bert_pooler, aa_len, map_AA, map_AA_idx,
              map_AS, map_AS_idx, aa_graph_length, aa_graph)

    fwd = jax.jit(inter_context_forward,
                  static_argnames=('max_inner_len', 'num_graphs', 'graph_len'))
    out = fwd(params, as_features, inputs,
              max_inner_len=int(aa_len_np.max()), num_graphs=B, graph_len=L)
    jax.block_until_ready(out)
    assert out.shape == (N_AS, IN_DIM)
    assert bool(jnp.all(jnp.isfinite(out)))
    print("KERNEL_OK")
</pallas_src>

<mosaic_0001>
module attributes {stable_mosaic.version = 11 : i64} {
  func.func @_inner_node_kernel(%arg0: i32, %arg1: memref<8x5x32xf32, #tpu.memory_space<vmem>>, %arg2: memref<8x1xi32, #tpu.memory_space<vmem>>, %arg3: memref<8x32xf32, #tpu.memory_space<vmem>>, %arg4: memref<32x16xf32, #tpu.memory_space<vmem>>, %arg5: memref<1x16xf32, #tpu.memory_space<vmem>>, %arg6: memref<8x48xf32, #tpu.memory_space<vmem>>) attributes {dimension_semantics = [#tpu.dimension_semantics<parallel>], iteration_bounds = array<i64: 1>, scalar_prefetch = 0 : i64, scratch_operands = 0 : i64, tpu.core_type = #tpu.core_type<tc>, window_params = [{transform_indices = @transform_0, window_bounds = array<i64: 8, 5, 32>}, {transform_indices = @transform_1, window_bounds = array<i64: 8, 1>}, {transform_indices = @transform_2, window_bounds = array<i64: 8, 32>}, {pipeline_mode = #tpu.pipeline_mode<synchronous>, transform_indices = @transform_3, window_bounds = array<i64: 32, 16>}, {pipeline_mode = #tpu.pipeline_mode<synchronous>, transform_indices = @transform_4, window_bounds = array<i64: 1, 16>}, {transform_indices = @transform_5, window_bounds = array<i64: 8, 48>}]} {
    %c0 = arith.constant 0 : index
    %c0_0 = arith.constant 0 : index
    %0 = vector.load %arg2[%c0, %c0_0] : memref<8x1xi32, #tpu.memory_space<vmem>>, vector<8x1xi32>
    %1 = tpu.iota {dimensions = array<i32: 1>} : vector<8x5xi32>
    %2 = vector.broadcast %0 : vector<8x1xi32> to vector<8x5xi32>
    %3 = arith.cmpi slt, %1, %2 : vector<8x5xi32>
    %4 = arith.extui %3 : vector<8x5xi1> to vector<8x5xi32>
    %5 = arith.sitofp %4 : vector<8x5xi32> to vector<8x5xf32>
    %6 = vector.shape_cast %5 : vector<8x5xf32> to vector<8x5x1xf32>
    %c0_1 = arith.constant 0 : index
    %c0_2 = arith.constant 0 : index
    %c0_3 = arith.constant 0 : index
    %7 = vector.load %arg1[%c0_1, %c0_2, %c0_3] : memref<8x5x32xf32, #tpu.memory_space<vmem>>, vector<8x5x32xf32>
    %8 = vector.broadcast %6 : vector<8x5x1xf32> to vector<8x5x32xf32>
    %9 = arith.mulf %7, %8 : vector<8x5x32xf32>
    %cst = arith.constant dense<0.000000e+00> : vector<8x32xf32>
    %10 = vector.multi_reduction <add>, %9, %cst [1] : vector<8x5x32xf32> to vector<8x32xf32>
    %c0_4 = arith.constant 0 : index
    %c0_5 = arith.constant 0 : index
    %11 = vector.load %arg4[%c0_4, %c0_5] : memref<32x16xf32, #tpu.memory_space<vmem>>, vector<32x16xf32>
    %cst_6 = arith.constant dense<0.000000e+00> : vector<8x16xf32>
    %12 = tpu.matmul %10, %11, %cst_6 {dimension_numbers = #tpu.dot_dimension_numbers<[1], [0], [0], [1], [0, 0, 1, 1], [], []>} : vector<8x32xf32>, vector<32x16xf32>, vector<8x16xf32> -> vector<8x16xf32>
    %c0_7 = arith.constant 0 : index
    %c0_8 = arith.constant 0 : index
    %13 = vector.load %arg5[%c0_7, %c0_8] : memref<1x16xf32, #tpu.memory_space<vmem>>, vector<1x16xf32>
    %cst_9 = arith.constant 5.000000e+00 : f32
    %14 = vector.broadcast %cst_9 : f32 to vector<1x16xf32>
    %15 = arith.mulf %14, %13 : vector<1x16xf32>
    %16 = vector.broadcast %15 : vector<1x16xf32> to vector<8x16xf32>
    %17 = arith.addf %12, %16 : vector<8x16xf32>
    %c0_10 = arith.constant 0 : index
    %c0_11 = arith.constant 0 : index
    %18 = vector.load %arg3[%c0_10, %c0_11] : memref<8x32xf32, #tpu.memory_space<vmem>>, vector<8x32xf32>
    %19 = tpu.concatenate %17, %18 in 1 : vector<8x16xf32>, vector<8x32xf32> -> vector<8x48xf32>
    %c0_12 = arith.constant 0 : index
    %c0_13 = arith.constant 0 : index
    %20 = vector.load %arg6[%c0_12, %c0_13] : memref<8x48xf32, #tpu.memory_space<vmem>>, vector<8x48xf32>
    tpu.vector_store %arg6[%c0_12, %c0_13], %19 {strides = array<i32>} : memref<8x48xf32, #tpu.memory_space<vmem>>, vector<8x48xf32>,
    return
  }
  func.func @transform_0(%arg0: i32) -> (i32, i32, i32) {
    %c0_i32 = arith.constant 0 : i32
    %c0_i32_0 = arith.constant 0 : i32
    %c0_i32_1 = arith.constant 0 : i32
    return %arg0, %c0_i32, %c0_i32_0 : i32, i32, i32
  }
  func.func @transform_1(%arg0: i32) -> (i32, i32) {
    %c0_i32 = arith.constant 0 : i32
    %c0_i32_0 = arith.constant 0 : i32
    return %arg0, %c0_i32 : i32, i32
  }
  func.func @transform_2(%arg0: i32) -> (i32, i32) {
    %c0_i32 = arith.constant 0 : i32
    %c0_i32_0 = arith.constant 0 : i32
    return %arg0, %c0_i32 : i32, i32
  }
  func.func @transform_3(%arg0: i32) -> (i32, i32) {
    %c0_i32 = arith.constant 0 : i32
    %c0_i32_0 = arith.constant 0 : i32
    %c0_i32_1 = arith.constant 0 : i32
    return %c0_i32, %c0_i32_0 : i32, i32
  }
  func.func @transform_4(%arg0: i32) -> (i32, i32) {
    %c0_i32 = arith.constant 0 : i32
    %c0_i32_0 = arith.constant 0 : i32
    %c0_i32_1 = arith.constant 0 : i32
    return %c0_i32, %c0_i32_0 : i32, i32
  }
  func.func @transform_5(%arg0: i32) -> (i32, i32) {
    %c0_i32 = arith.constant 0 : i32
    %c0_i32_0 = arith.constant 0 : i32
    return %arg0, %c0_i32 : i32, i32
  }
}

module attributes {stable_mosaic.version = 11 : i64} {
  func.func @_graph_encoder_kernel(%arg0: i32, %arg1: memref<2xi32, #tpu.memory_space<smem>>, %arg2: memref<1x4x48xf32, #tpu.memory_space<vmem>>, %arg3: memref<1x4x4xf32, #tpu.memory_space<vmem>>, %arg4: memref<160x144xf32, #tpu.memory_space<vmem>>, %arg5: memref<8x144xf32, #tpu.memory_space<vmem>>, %arg6: memref<1x4x48xf32, #tpu.memory_space<vmem>>) attributes {dimension_semantics = [#tpu.dimension_semantics<parallel>], iteration_bounds = array<i64: 2>, scalar_prefetch = 1 : i64, scratch_operands = 0 : i64, tpu.core_type = #tpu.core_type<tc>, window_params = [{transform_indices = @transform_0, window_bounds = array<i64: 1, 4, 48>}, {transform_indices = @transform_1, window_bounds = array<i64: 1, 4, 4>}, {pipeline_mode = #tpu.pipeline_mode<synchronous>, transform_indices = @transform_2, window_bounds = array<i64: 160, 144>}, {pipeline_mode = #tpu.pipeline_mode<synchronous>, transform_indices = @transform_3, window_bounds = array<i64: 8, 144>}, {transform_indices = @transform_4, window_bounds = array<i64: 1, 4, 48>}]} {
    %c0 = arith.constant 0 : index
    %c0_0 = arith.constant 0 : index
    %c0_1 = arith.constant 0 : index
    %0 = vector.load %arg2[%c0, %c0_0, %c0_1] : memref<1x4x48xf32, #tpu.memory_space<vmem>>, vector<1x4x48xf32>
    %1 = vector.shape_cast %0 : vector<1x4x48xf32> to vector<4x48xf32>
    %c0_2 = arith.constant 0 : index
    %c0_3 = arith.constant 0 : index
    %c0_4 = arith.constant 0 : index
    %2 = vector.load %arg3[%c0_2, %c0_3, %c0_4] : memref<1x4x4xf32, #tpu.memory_space<vmem>>, vector<1x4x4xf32>
    %3 = vector.shape_cast %2 : vector<1x4x4xf32> to vector<4x4xf32>
    %4 = arith.index_cast %arg0 : i32 to index
    %5 = memref.load %arg1[%4] : memref<2xi32, #tpu.memory_space<smem>>
    %6 = tpu.iota {dimensions = array<i32: 1>} : vector<4x4xi32>
    %7 = vector.broadcast %5 : i32 to vector<4x4xi32>
    %8 = arith.cmpi slt, %6, %7 : vector<4x4xi32>
    %cst = arith.constant 0.000000e+00 : f32
    %9 = vector.broadcast %cst : f32 to vector<4x4xf32>
    %10 = arith.cmpf one, %3, %9 : vector<4x4xf32>
    %11 = arith.andi %10, %8 : vector<4x4xi1>
    %cst_5 = arith.constant 0.000000e+00 : f32
    %cst_6 = arith.constant -1.000000e+09 : f32
    %12 = vector.broadcast %cst_5 : f32 to vector<4x4xf32>
    %13 = vector.broadcast %cst_6 : f32 to vector<4x4xf32>
    %14 = arith.select %11, %12, %13 : vector<4x4xi1>, vector<4x4xf32>
    %15 = tpu.transpose %3, [1, 0] : vector<4x4xf32> -> vector<4x4xf32>
    %cst_7 = arith.constant 0.000000e+00 : f32
    %16 = vector.broadcast %cst_7 : f32 to vector<4x4xf32>
    %17 = arith.cmpf one, %15, %16 : vector<4x4xf32>
    %18 = arith.andi %17, %8 : vector<4x4xi1>
    %cst_8 = arith.constant 0.000000e+00 : f32
    %cst_9 = arith.constant -1.000000e+09 : f32
    %19 = vector.broadcast %cst_8 : f32 to vector<4x4xf32>
    %20 = vector.broadcast %cst_9 : f32 to vector<4x4xf32>
    %21 = arith.select %18, %19, %20 : vector<4x4xi1>, vector<4x4xf32>
    %c0_10 = arith.constant 0 : index
    %c0_11 = arith.constant 0 : index
    %22 = vector.load %arg4[%c0_10, %c0_11] : memref<160x144xf32, #tpu.memory_space<vmem>>, vector<48x144xf32>
    %c48 = arith.constant 48 : index
    %c0_12 = arith.constant 0 : index
    %23 = vector.load %arg4[%c48, %c0_12] : memref<160x144xf32, #tpu.memory_space<vmem>>, vector<48x48xf32>
    %c96 = arith.constant 96 : index
    %c0_13 = arith.constant 0 : index
    %24 = vector.load %arg4[%c96, %c0_13] : memref<160x144xf32, #tpu.memory_space<vmem>>, vector<48x16xf32>
    %c144 = arith.constant 144 : index
    %c0_14 = arith.constant 0 : index
    %25 = vector.load %arg4[%c144, %c0_14] : memref<160x144xf32, #tpu.memory_space<vmem>>, vector<16x48xf32>
    %c0_15 = arith.constant 0 : index
    %c0_16 = arith.constant 0 : index
    %26 = vector.load %arg5[%c0_15, %c0_16] : memref<8x144xf32, #tpu.memory_space<vmem>>, vector<1x144xf32>
    %c1 = arith.constant 1 : index
    %c0_17 = arith.constant 0 : index
    %27 = vector.load %arg5[%c1, %c0_17] : memref<8x144xf32, #tpu.memory_space<vmem>>, vector<1x48xf32>
    %c2 = arith.constant 2 : index
    %c0_18 = arith.constant 0 : index
    %28 = vector.load %arg5[%c2, %c0_18] : memref<8x144xf32, #tpu.memory_space<vmem>>, vector<1x16xf32>
    %c3 = arith.constant 3 : index
    %c0_19 = arith.constant 0 : index
    %29 = vector.load %arg5[%c3, %c0_19] : memref<8x144xf32, #tpu.memory_space<vmem>>, vector<1x48xf32>
    %c4 = arith.constant 4 : index
    %c0_20 = arith.constant 0 : index
    %30 = vector.load %arg5[%c4, %c0_20] : memref<8x144xf32, #tpu.memory_space<vmem>>, vector<1x48xf32>
    %c5 = arith.constant 5 : index
    %c0_21 = arith.constant 0 : index
    %31 = vector.load %arg5[%c5, %c0_21] : memref<8x144xf32, #tpu.memory_space<vmem>>, vector<1x48xf32>
    %c6 = arith.constant 6 : index
    %c0_22 = arith.constant 0 : index
    %32 = vector.load %arg5[%c6, %c0_22] : memref<8x144xf32, #tpu.memory_space<vmem>>, vector<1x48xf32>
    %c7 = arith.constant 7 : index
    %c0_23 = arith.constant 0 : index
    %33 = vector.load %arg5[%c7, %c0_23] : memref<8x144xf32, #tpu.memory_space<vmem>>, vector<1x48xf32>
    %cst_24 = arith.constant dense<0.000000e+00> : vector<4x144xf32>
    %34 = tpu.matmul %1, %22, %cst_24 {dimension_numbers = #tpu.dot_dimension_numbers<[1], [0], [0], [1], [0, 0, 1, 1], [], []>} : vector<4x48xf32>, vector<48x144xf32>, vector<4x144xf32> -> vector<4x144xf32>
    %35 = vector.broadcast %26 : vector<1x144xf32> to vector<4x144xf32>
    %36 = arith.addf %34, %35 : vector<4x144xf32>
    %37 = vector.extract_strided_slice %36 {offsets = [0, 0], sizes = [4, 48], strides = [1, 1]} : vector<4x144xf32> to vector<4x48xf32>
    %cst_25 = arith.constant 0.288675129 : f32
    %38 = vector.broadcast %cst_25 : f32 to vector<4x48xf32>
    %39 = arith.mulf %37, %38 : vector<4x48xf32>
    %40 = vector.extract_strided_slice %36 {offsets = [0, 48], sizes = [4, 48], strides = [1, 1]} : vector<4x144xf32> to vector<4x48xf32>
    %41 = vector.extract_strided_slice %36 {offsets = [0, 96], sizes = [4, 48], strides = [1, 1]} : vector<4x144xf32> to vector<4x48xf32>
    %42 = vector.extract_strided_slice %39 {offsets = [0, 0], sizes = [4, 12], strides = [1, 1]} : vector<4x48xf32> to vector<4x12xf32>
    %43 = vector.extract_strided_slice %40 {offsets = [0, 0], sizes = [4, 12], strides = [1, 1]} : vector<4x48xf32> to vector<4x12xf32>
    %44 = vector.extract_strided_slice %41 {offsets = [0, 0], sizes = [4, 12], strides = [1, 1]} : vector<4x48xf32> to vector<4x12xf32>
    %cst_26 = arith.constant dense<0.000000e+00> : vector<4x4xf32>
    %45 = tpu.matmul %42, %43, %cst_26 {dimension_numbers = #tpu.dot_dimension_numbers<[1], [1], [0], [0], [0, 0, 1, 0], [], []>} : vector<4x12xf32>, vector<4x12xf32>, vector<4x4xf32> -> vector<4x4xf32>
    %46 = arith.addf %45, %14 : vector<4x4xf32>
    %cst_27 = arith.constant dense<0xFF800000> : vector<4xf32>
    %47 = vector.multi_reduction <maximumf>, %46, %cst_27 [1] : vector<4x4xf32> to vector<4xf32>
    %cst_28 = arith.constant 0xFF800000 : f32
    %48 = vector.broadcast %cst_28 : f32 to vector<4xf32>
    %49 = arith.maximumf %48, %47 : vector<4xf32>
    %50 = vector.shape_cast %49 : vector<4xf32> to vector<4x1xf32>
    %51 = vector.broadcast %50 : vector<4x1xf32> to vector<4x4xf32>
    %52 = arith.subf %46, %51 : vector<4x4xf32>
    %53 = math.exp %52 : vector<4x4xf32>
    %cst_29 = arith.constant dense<0.000000e+00> : vector<4xf32>
    %54 = vector.multi_reduction <add>, %53, %cst_29 [1] : vector<4x4xf32> to vector<4xf32>
    %55 = vector.shape_cast %54 : vector<4xf32> to vector<4x1xf32>
    %56 = vector.broadcast %55 : vector<4x1xf32> to vector<4x4xf32>
    %57 = arith.divf %53, %56 : vector<4x4xf32>
    %58 = arith.addf %45, %21 : vector<4x4xf32>
    %cst_30 = arith.constant dense<0xFF800000> : vector<4xf32>
    %59 = vector.multi_reduction <maximumf>, %58, %cst_30 [1] : vector<4x4xf32> to vector<4xf32>
    %cst_31 = arith.constant 0xFF800000 : f32
    %60 = vector.broadcast %cst_31 : f32 to vector<4xf32>
    %61 = arith.maximumf %60, %59 : vector<4xf32>
    %62 = vector.shape_cast %61 : vector<4xf32> to vector<4x1xf32>
    %63 = vector.broadcast %62 : vector<4x1xf32> to vector<4x4xf32>
    %64 = arith.subf %58, %63 : vector<4x4xf32>
    %65 = math.exp %64 : vector<4x4xf32>
    %cst_32 = arith.constant dense<0.000000e+00> : vector<4xf32>
    %66 = vector.multi_reduction <add>, %65, %cst_32 [1] : vector<4x4xf32> to vector<4xf32>
    %67 = vector.shape_cast %66 : vector<4xf32> to vector<4x1xf32>
    %68 = vector.broadcast %67 : vector<4x1xf32> to vector<4x4xf32>
    %69 = arith.divf %65, %68 : vector<4x4xf32>
    %cst_33 = arith.constant dense<0.000000e+00> : vector<4x12xf32>
    %70 = tpu.matmul %57, %44, %cst_33 {dimension_numbers = #tpu.dot_dimension_numbers<[1], [0], [0], [1], [0, 0, 1, 1], [], []>} : vector<4x4xf32>, vector<4x12xf32>, vector<4x12xf32> -> vector<4x12xf32>
    %cst_34 = arith.constant dense<0.000000e+00> : vector<4x12xf32>
    %71 = tpu.matmul %69, %44, %cst_34 {dimension_numbers = #tpu.dot_dimension_numbers<[1], [0], [0], [1], [0, 0, 1, 1], [], []>} : vector<4x4xf32>, vector<4x12xf32>, vector<4x12xf32> -> vector<4x12xf32>
    %72 = vector.extract_strided_slice %39 {offsets = [0, 12], sizes = [4, 12], strides = [1, 1]} : vector<4x48xf32> to vector<4x12xf32>
    %73 = vector.extract_strided_slice %40 {offsets = [0, 12], sizes = [4, 12], strides = [1, 1]} : vector<4x48xf32> to vector<4x12xf32>
    %74 = vector.extract_strided_slice %41 {offsets = [0, 12], sizes = [4, 12], strides = [1, 1]} : vector<4x48xf32> to vector<4x12xf32>
    %cst_35 = arith.constant dense<0.000000e+00> : vector<4x4xf32>
    %75 = tpu.matmul %72, %73, %cst_35 {dimension_numbers = #tpu.dot_dimension_numbers<[1], [1], [0], [0], [0, 0, 1, 0], [], []>} : vector<4x12xf32>, vector<4x12xf32>, vector<4x4xf32> -> vector<4x4xf32>
    %76 = arith.addf %75, %14 : vector<4x4xf32>
    %cst_36 = arith.constant dense<0xFF800000> : vector<4xf32>
    %77 = vector.multi_reduction <maximumf>, %76, %cst_36 [1] : vector<4x4xf32> to vector<4xf32>
    %cst_37 = arith.constant 0xFF800000 : f32
    %78 = vector.broadcast %cst_37 : f32 to vector<4xf32>
    %79 = arith.maximumf %78, %77 : vector<4xf32>
    %80 = vector.shape_cast %79 : vector<4xf32> to vector<4x1xf32>
    %81 = vector.broadcast %80 : vector<4x1xf32> to vector<4x4xf32>
    %82 = arith.subf %76, %81 : vector<4x4xf32>
    %83 = math.exp %82 : vector<4x4xf32>
    %cst_38 = arith.constant dense<0.000000e+00> : vector<4xf32>
    %84 = vector.multi_reduction <add>, %83, %cst_38 [1] : vector<4x4xf32> to vector<4xf32>
    %85 = vector.shape_cast %84 : vector<4xf32> to vector<4x1xf32>
    %86 = vector.broadcast %85 : vector<4x1xf32> to vector<4x4xf32>
    %87 = arith.divf %83, %86 : vector<4x4xf32>
    %88 = arith.addf %75, %21 : vector<4x4xf32>
    %cst_39 = arith.constant dense<0xFF800000> : vector<4xf32>
    %89 = vector.multi_reduction <maximumf>, %88, %cst_39 [1] : vector<4x4xf32> to vector<4xf32>
    %cst_40 = arith.constant 0xFF800000 : f32
    %90 = vector.broadcast %cst_40 : f32 to vector<4xf32>
    %91 = arith.maximumf %90, %89 : vector<4xf32>
    %92 = vector.shape_cast %91 : vector<4xf32> to vector<4x1xf32>
    %93 = vector.broadcast %92 : vector<4x1xf32> to vector<4x4xf32>
    %94 = arith.subf %88, %93 : vector<4x4xf32>
    %95 = math.exp %94 : vector<4x4xf32>
    %cst_41 = arith.constant dense<0.000000e+00> : vector<4xf32>
    %96 = vector.multi_reduction <add>, %95, %cst_41 [1] : vector<4x4xf32> to vector<4xf32>
    %97 = vector.shape_cast %96 : vector<4xf32> to vector<4x1xf32>
    %98 = vector.broadcast %97 : vector<4x1xf32> to vector<4x4xf32>
    %99 = arith.divf %95, %98 : vector<4x4xf32>
    %cst_42 = arith.constant dense<0.000000e+00> : vector<4x12xf32>
    %100 = tpu.matmul %87, %74, %cst_42 {dimension_numbers = #tpu.dot_dimension_numbers<[1], [0], [0], [1], [0, 0, 1, 1], [], []>} : vector<4x4xf32>, vector<4x12xf32>, vector<4x12xf32> -> vector<4x12xf32>
    %cst_43 = arith.constant dense<0.000000e+00> : vector<4x12xf32>
    %101 = tpu.matmul %99, %74, %cst_43 {dimension_numbers = #tpu.dot_dimension_numbers<[1], [0], [0], [1], [0, 0, 1, 1], [], []>} : vector<4x4xf32>, vector<4x12xf32>, vector<4x12xf32> -> vector<4x12xf32>
    %102 = vector.extract_strided_slice %39 {offsets = [0, 24], sizes = [4, 12], strides = [1, 1]} : vector<4x48xf32> to vector<4x12xf32>
    %103 = vector.extract_strided_slice %40 {offsets = [0, 24], sizes = [4, 12], strides = [1, 1]} : vector<4x48xf32> to vector<4x12xf32>
    %104 = vector.extract_strided_slice %41 {offsets = [0, 24], sizes = [4, 12], strides = [1, 1]} : vector<4x48xf32> to vector<4x12xf32>
    %cst_44 = arith.constant dense<0.000000e+00> : vector<4x4xf32>
    %105 = tpu.matmul %102, %103, %cst_44 {dimension_numbers = #tpu.dot_dimension_numbers<[1], [1], [0], [0], [0, 0, 1, 0], [], []>} : vector<4x12xf32>, vector<4x12xf32>, vector<4x4xf32> -> vector<4x4xf32>
    %106 = arith.addf %105, %14 : vector<4x4xf32>
    %cst_45 = arith.constant dense<0xFF800000> : vector<4xf32>
    %107 = vector.multi_reduction <maximumf>, %106, %cst_45 [1] : vector<4x4xf32> to vector<4xf32>
    %cst_46 = arith.constant 0xFF800000 : f32
    %108 = vector.broadcast %cst_46 : f32 to vector<4xf32>
    %109 = arith.maximumf %108, %107 : vector<4xf32>
    %110 = vector.shape_cast %109 : vector<4xf32> to vector<4x1xf32>
    %111 = vector.broadcast %110 : vector<4x1xf32> to vector<4x4xf32>
    %112 = arith.subf %106, %111 : vector<4x4xf32>
    %113 = math.exp %112 : vector<4x4xf32>
    %cst_47 = arith.constant dense<0.000000e+00> : vector<4xf32>
    %114 = vector.multi_reduction <add>, %113, %cst_47 [1] : vector<4x4xf32> to vector<4xf32>
    %115 = vector.shape_cast %114 : vector<4xf32> to vector<4x1xf32>
    %116 = vector.broadcast %115 : vector<4x1xf32> to vector<4x4xf32>
    %117 = arith.divf %113, %116 : vector<4x4xf32>
    %118 = arith.addf %105, %21 : vector<4x4xf32>
    %cst_48 = arith.constant dense<0xFF800000> : vector<4xf32>
    %119 = vector.multi_reduction <maximumf>, %118, %cst_48 [1] : vector<4x4xf32> to vector<4xf32>
    %cst_49 = arith.constant 0xFF800000 : f32
    %120 = vector.broadcast %cst_49 : f32 to vector<4xf32>
    %121 = arith.maximumf %120, %119 : vector<4xf32>
    %122 = vector.shape_cast %121 : vector<4xf32> to vector<4x1xf32>
    %123 = vector.broadcast %122 : vector<4x1xf32> to vector<4x4xf32>
    %124 = arith.subf %118, %123 : vector<4x4xf32>
    %125 = math.exp %124 : vector<4x4xf32>
    %cst_50 = arith.constant dense<0.000000e+00> : vector<4xf32>
    %126 = vector.multi_reduction <add>, %125, %cst_50 [1] : vector<4x4xf32> to vector<4xf32>
    %127 = vector.shape_cast %126 : vector<4xf32> to vector<4x1xf32>
    %128 = vector.broadcast %127 : vector<4x1xf32> to vector<4x4xf32>
    %129 = arith.divf %125, %128 : vector<4x4xf32>
    %cst_51 = arith.constant dense<0.000000e+00> : vector<4x12xf32>
    %130 = tpu.matmul %117, %104, %cst_51 {dimension_numbers = #tpu.dot_dimension_numbers<[1], [0], [0], [1], [0, 0, 1, 1], [], []>} : vector<4x4xf32>, vector<4x12xf32>, vector<4x12xf32> -> vector<4x12xf32>
    %cst_52 = arith.constant dense<0.000000e+00> : vector<4x12xf32>
    %131 = tpu.matmul %129, %104, %cst_52 {dimension_numbers = #tpu.dot_dimension_numbers<[1], [0], [0], [1], [0, 0, 1, 1], [], []>} : vector<4x4xf32>, vector<4x12xf32>, vector<4x12xf32> -> vector<4x12xf32>
    %132 = vector.extract_strided_slice %39 {offsets = [0, 36], sizes = [4, 12], strides = [1, 1]} : vector<4x48xf32> to vector<4x12xf32>
    %133 = vector.extract_strided_slice %40 {offsets = [0, 36], sizes = [4, 12], strides = [1, 1]} : vector<4x48xf32> to vector<4x12xf32>
    %134 = vector.extract_strided_slice %41 {offsets = [0, 36], sizes = [4, 12], strides = [1, 1]} : vector<4x48xf32> to vector<4x12xf32>
    %cst_53 = arith.constant dense<0.000000e+00> : vector<4x4xf32>
    %135 = tpu.matmul %132, %133, %cst_53 {dimension_numbers = #tpu.dot_dimension_numbers<[1], [1], [0], [0], [0, 0, 1, 0], [], []>} : vector<4x12xf32>, vector<4x12xf32>, vector<4x4xf32> -> vector<4x4xf32>
    %136 = arith.addf %135, %14 : vector<4x4xf32>
    %cst_54 = arith.constant dense<0xFF800000> : vector<4xf32>
    %137 = vector.multi_reduction <maximumf>, %136, %cst_54 [1] : vector<4x4xf32> to vector<4xf32>
    %cst_55 = arith.constant 0xFF800000 : f32
    %138 = vector.broadcast %cst_55 : f32 to vector<4xf32>
    %139 = arith.maximumf %138, %137 : vector<4xf32>
    %140 = vector.shape_cast %139 : vector<4xf32> to vector<4x1xf32>
    %141 = vector.broadcast %140 : vector<4x1xf32> to vector<4x4xf32>
    %142 = arith.subf %136, %141 : vector<4x4xf32>
    %143 = math.exp %142 : vector<4x4xf32>
    %cst_56 = arith.constant dense<0.000000e+00> : vector<4xf32>
    %144 = vector.multi_reduction <add>, %143, %cst_56 [1] : vector<4x4xf32> to vector<4xf32>
    %145 = vector.shape_cast %144 : vector<4xf32> to vector<4x1xf32>
    %146 = vector.broadcast %145 : vector<4x1xf32> to vector<4x4xf32>
    %147 = arith.divf %143, %146 : vector<4x4xf32>
    %148 = arith.addf %135, %21 : vector<4x4xf32>
    %cst_57 = arith.constant dense<0xFF800000> : vector<4xf32>
    %149 = vector.multi_reduction <maximumf>, %148, %cst_57 [1] : vector<4x4xf32> to vector<4xf32>
    %cst_58 = arith.constant 0xFF800000 : f32
    %150 = vector.broadcast %cst_58 : f32 to vector<4xf32>
    %151 = arith.maximumf %150, %149 : vector<4xf32>
    %152 = vector.shape_cast %151 : vector<4xf32> to vector<4x1xf32>
    %153 = vector.broadcast %152 : vector<4x1xf32> to vector<4x4xf32>
    %154 = arith.subf %148, %153 : vector<4x4xf32>
    %155 = math.exp %154 : vector<4x4xf32>
    %cst_59 = arith.constant dense<0.000000e+00> : vector<4xf32>
    %156 = vector.multi_reduction <add>, %155, %cst_59 [1] : vector<4x4xf32> to vector<4xf32>
    %157 = vector.shape_cast %156 : vector<4xf32> to vector<4x1xf32>
    %158 = vector.broadcast %157 : vector<4x1xf32> to vector<4x4xf32>
    %159 = arith.divf %155, %158 : vector<4x4xf32>
    %cst_60 = arith.constant dense<0.000000e+00> : vector<4x12xf32>
    %160 = tpu.matmul %147, %134, %cst_60 {dimension_numbers = #tpu.dot_dimension_numbers<[1], [0], [0], [1], [0, 0, 1, 1], [], []>} : vector<4x4xf32>, vector<4x12xf32>, vector<4x12xf32> -> vector<4x12xf32>
    %cst_61 = arith.constant dense<0.000000e+00> : vector<4x12xf32>
    %161 = tpu.matmul %159, %134, %cst_61 {dimension_numbers = #tpu.dot_dimension_numbers<[1], [0], [0], [1], [0, 0, 1, 1], [], []>} : vector<4x4xf32>, vector<4x12xf32>, vector<4x12xf32> -> vector<4x12xf32>
    %162 = tpu.concatenate %70, %100, %130, %160 in 1 : vector<4x12xf32>, vector<4x12xf32>, vector<4x12xf32>, vector<4x12xf32> -> vector<4x48xf32>
    %163 = tpu.concatenate %71, %101, %131, %161 in 1 : vector<4x12xf32>, vector<4x12xf32>, vector<4x12xf32>, vector<4x12xf32> -> vector<4x48xf32>
    %164 = tpu.concatenate %162, %163 in 0 : vector<4x48xf32>, vector<4x48xf32> -> vector<8x48xf32>
    %cst_62 = arith.constant dense<0.000000e+00> : vector<8x48xf32>
    %165 = tpu.matmul %164, %23, %cst_62 {dimension_numbers = #tpu.dot_dimension_numbers<[1], [0], [0], [1], [0, 0, 1, 1], [], []>} : vector<8x48xf32>, vector<48x48xf32>, vector<8x48xf32> -> vector<8x48xf32>
    %166 = vector.broadcast %27 : vector<1x48xf32> to vector<8x48xf32>
    %167 = arith.addf %165, %166 : vector<8x48xf32>
    %168 = tpu.concatenate %1, %1 in 0 : vector<4x48xf32>, vector<4x48xf32> -> vector<8x48xf32>
    %169 = arith.addf %168, %167 : vector<8x48xf32>
    %cst_63 = arith.constant dense<0.000000e+00> : vector<8xf32>
    %170 = vector.multi_reduction <add>, %169, %cst_63 [1] : vector<8x48xf32> to vector<8xf32>
    %171 = vector.shape_cast %170 : vector<8xf32> to vector<8x1xf32>
    %cst_64 = arith.constant 4.800000e+01 : f32
    %172 = vector.broadcast %cst_64 : f32 to vector<8x1xf32>
    %173 = arith.divf %171, %172 : vector<8x1xf32>
    %174 = vector.broadcast %173 : vector<8x1xf32> to vector<8x48xf32>
    %175 = arith.subf %169, %174 : vector<8x48xf32>
    %176 = arith.mulf %175, %175 : vector<8x48xf32>
    %cst_65 = arith.constant dense<0.000000e+00> : vector<8xf32>
    %177 = vector.multi_reduction <add>, %176, %cst_65 [1] : vector<8x48xf32> to vector<8xf32>
    %178 = vector.shape_cast %177 : vector<8xf32> to vector<8x1xf32>
    %cst_66 = arith.constant 4.800000e+01 : f32
    %179 = vector.broadcast %cst_66 : f32 to vector<8x1xf32>
    %180 = arith.divf %178, %179 : vector<8x1xf32>
    %181 = vector.broadcast %173 : vector<8x1xf32> to vector<8x48xf32>
    %182 = arith.subf %169, %181 : vector<8x48xf32>
    %cst_67 = arith.constant 9.99999974E-6 : f32
    %183 = vector.broadcast %cst_67 : f32 to vector<8x1xf32>
    %184 = arith.addf %180, %183 : vector<8x1xf32>
    %185 = math.rsqrt %184 : vector<8x1xf32>
    %186 = vector.broadcast %185 : vector<8x1xf32> to vector<8x48xf32>
    %187 = arith.mulf %182, %186 : vector<8x48xf32>
    %188 = vector.broadcast %30 : vector<1x48xf32> to vector<8x48xf32>
    %189 = arith.mulf %187, %188 : vector<8x48xf32>
    %190 = vector.broadcast %31 : vector<1x48xf32> to vector<8x48xf32>
    %191 = arith.addf %189, %190 : vector<8x48xf32>
    %cst_68 = arith.constant dense<0.000000e+00> : vector<8x16xf32>
    %192 = tpu.matmul %191, %24, %cst_68 {dimension_numbers = #tpu.dot_dimension_numbers<[1], [0], [0], [1], [0, 0, 1, 1], [], []>} : vector<8x48xf32>, vector<48x16xf32>, vector<8x16xf32> -> vector<8x16xf32>
    %193 = vector.broadcast %28 : vector<1x16xf32> to vector<8x16xf32>
    %194 = arith.addf %192, %193 : vector<8x16xf32>
    %cst_69 = arith.constant 0.000000e+00 : f32
    %195 = vector.broadcast %cst_69 : f32 to vector<8x16xf32>
    %196 = arith.maximumf %194, %195 : vector<8x16xf32>
    %cst_70 = arith.constant dense<0.000000e+00> : vector<8x48xf32>
    %197 = tpu.matmul %196, %25, %cst_70 {dimension_numbers = #tpu.dot_dimension_numbers<[1], [0], [0], [1], [0, 0, 1, 1], [], []>} : vector<8x16xf32>, vector<16x48xf32>, vector<8x48xf32> -> vector<8x48xf32>
    %198 = vector.broadcast %29 : vector<1x48xf32> to vector<8x48xf32>
    %199 = arith.addf %197, %198 : vector<8x48xf32>
    %200 = arith.addf %191, %199 : vector<8x48xf32>
    %cst_71 = arith.constant dense<0.000000e+00> : vector<8xf32>
    %201 = vector.multi_reduction <add>, %200, %cst_71 [1] : vector<8x48xf32> to vector<8xf32>
    %202 = vector.shape_cast %201 : vector<8xf32> to vector<8x1xf32>
    %cst_72 = arith.constant 4.800000e+01 : f32
    %203 = vector.broadcast %cst_72 : f32 to vector<8x1xf32>
    %204 = arith.divf %202, %203 : vector<8x1xf32>
    %205 = vector.broadcast %204 : vector<8x1xf32> to vector<8x48xf32>
    %206 = arith.subf %200, %205 : vector<8x48xf32>
    %207 = arith.mulf %206, %206 : vector<8x48xf32>
    %cst_73 = arith.constant dense<0.000000e+00> : vector<8xf32>
    %208 = vector.multi_reduction <add>, %207, %cst_73 [1] : vector<8x48xf32> to vector<8xf32>
    %209 = vector.shape_cast %208 : vector<8xf32> to vector<8x1xf32>
    %cst_74 = arith.constant 4.800000e+01 : f32
    %210 = vector.broadcast %cst_74 : f32 to vector<8x1xf32>
    %211 = arith.divf %209, %210 : vector<8x1xf32>
    %212 = vector.broadcast %204 : vector<8x1xf32> to vector<8x48xf32>
    %213 = arith.subf %200, %212 : vector<8x48xf32>
    %cst_75 = arith.constant 9.99999974E-6 : f32
    %214 = vector.broadcast %cst_75 : f32 to vector<8x1xf32>
    %215 = arith.addf %211, %214 : vector<8x1xf32>
    %216 = math.rsqrt %215 : vector<8x1xf32>
    %217 = vector.broadcast %216 : vector<8x1xf32> to vector<8x48xf32>
    %218 = arith.mulf %213, %217 : vector<8x48xf32>
    %219 = vector.broadcast %32 : vector<1x48xf32> to vector<8x48xf32>
    %220 = arith.mulf %218, %219 : vector<8x48xf32>
    %221 = vector.broadcast %33 : vector<1x48xf32> to vector<8x48xf32>
    %222 = arith.addf %220, %221 : vector<8x48xf32>
    %223 = vector.extract_strided_slice %222 {offsets = [0, 0], sizes = [4, 48], strides = [1, 1]} : vector<8x48xf32> to vector<4x48xf32>
    %224 = vector.extract_strided_slice %222 {offsets = [4, 0], sizes = [4, 48], strides = [1, 1]} : vector<8x48xf32> to vector<4x48xf32>
    %225 = arith.addf %223, %224 : vector<4x48xf32>
    %c0_76 = arith.constant 0 : index
    %c0_77 = arith.constant 0 : index
    %c0_78 = arith.constant 0 : index
    %226 = vector.load %arg6[%c0_76, %c0_77, %c0_78] : memref<1x4x48xf32, #tpu.memory_space<vmem>>, vector<1x4x48xf32>
    %227 = vector.shape_cast %226 : vector<1x4x48xf32> to vector<4x48xf32>
    %228 = vector.shape_cast %225 : vector<4x48xf32> to vector<1x4x48xf32>
    tpu.vector_store %arg6[%c0_76, %c0_77, %c0_78], %228 {strides = array<i32>} : memref<1x4x48xf32, #tpu.memory_space<vmem>>, vector<1x4x48xf32>,
    return
  }
  func.func @transform_0(%arg0: i32, %arg1: memref<2xi32, #tpu.memory_space<smem>>) -> (i32, i32, i32) {
    %c0_i32 = arith.constant 0 : i32
    %c0_i32_0 = arith.constant 0 : i32
    %c0_i32_1 = arith.constant 0 : i32
    return %arg0, %c0_i32, %c0_i32_0 : i32, i32, i32
  }
  func.func @transform_1(%arg0: i32, %arg1: memref<2xi32, #tpu.memory_space<smem>>) -> (i32, i32, i32) {
    %c0_i32 = arith.constant 0 : i32
    %c0_i32_0 = arith.constant 0 : i32
    %c0_i32_1 = arith.constant 0 : i32
    return %arg0, %c0_i32, %c0_i32_0 : i32, i32, i32
  }
  func.func @transform_2(%arg0: i32, %arg1: memref<2xi32, #tpu.memory_space<smem>>) -> (i32, i32) {
    %c0_i32 = arith.constant 0 : i32
    %c0_i32_0 = arith.constant 0 : i32
    %c0_i32_1 = arith.constant 0 : i32
    return %c0_i32, %c0_i32_0 : i32, i32
  }
  func.func @transform_3(%arg0: i32, %arg1: memref<2xi32, #tpu.memory_space<smem>>) -> (i32, i32) {
    %c0_i32 = arith.constant 0 : i32
    %c0_i32_0 = arith.constant 0 : i32
    %c0_i32_1 = arith.constant 0 : i32
    return %c0_i32, %c0_i32_0 : i32, i32
  }
  func.func @transform_4(%arg0: i32, %arg1: memref<2xi32, #tpu.memory_space<smem>>) -> (i32, i32, i32) {
    %c0_i32 = arith.constant 0 : i32
    %c0_i32_0 = arith.constant 0 : i32
    %c0_i32_1 = arith.constant 0 : i32
    return %arg0, %c0_i32, %c0_i32_0 : i32, i32, i32
  }
}

</mosaic_0001>

<bundles_post_ra>
// kernel: inter_context_forward.2
= control target key start
LH: loop header
LB: loop body
LE: loop exit
PB: predicated region body
PF: predicated region fallthrough
CT: control target
= control target key end

     0   :  { %v301_v0 = vmov 0   ;;  %v302_v2 = vmov 0.0   ;;  %v21_v3 = vlaneseq  ;;  %vm303_vm1 = vmmov 0   ;;  %s304_s29 = smov 16   ;;  %s405_s1 = inlined_call_operand.vmem [shape: s32[8,1], index: 1, kind: input, shape index: {}]   ;;  %s406_s3 = inlined_call_operand.vmem [shape: f32[32,16], index: 3, kind: input, shape index: {}]   ;;  %s407_s2 = inlined_call_operand.vmem [shape: f32[8,32], index: 2, kind: input, shape index: {}]   ;;  %s408_s0 = inlined_call_operand.vmem [shape: f32[8,5,32], index: 0, kind: input, shape index: {}]   ;;  %s409_s4 = inlined_call_operand.vmem [shape: f32[1,16], index: 4, kind: input, shape index: {}]   ;;  %s410_s5 = inlined_call_operand.vmem [shape: f32[8,48], index: 5, kind: output, shape index: {}]  }
   0x1   :  { %300 = vset.pattern.permute.xlu0 %v301_v0  ;;  %v20_v1 = vld [vmem:[%s405_s1] sm:$0xff]  ;;  %285 = vmatprep.subr.mxu0 %v302_v2  ;;  %v161_v22 = vld [vmem:[%s406_s3 + $0x18] sm:$0xff]  ;;  %v160_v25 = vld [vmem:[%s406_s3 + $0x10] sm:$0xff]  ;;  %vm101_vm2 = vcmask 258048   ;;  %vm178_vm3 = vcmask 1041409   ;;  %vm180_vm4 = vcmask 1042434  }
   0x2   :  { %24 = vperm.xlu0 %300, %v20_v1   ;;  %v338_v4 = vshrl.u32 %v21_v3, 7  ;;  %v22_v5 = vand.u32 127, %v21_v3  ;;  %286 = vmatpush3.msra.mxu0 %v161_v22  ;;  %v159_v26 = vld [vmem:[%s406_s3 + $0x8] sm:$0xff]  ;;  %v158_v27 = vld [vmem:[%s406_s3] sm:$0xff]  ;;  %v87_v35 = vld [vmem:[%s408_s0 + $0x10] sm:$0x1f] }
   0x3   :  { %287 = vmatprep.subr.mxu0 %v302_v2  ;;  %293 = vmatprep.mubr.msk.f32.mxu0 %vm303_vm1, %v302_v2  ;;  %v265_v28 = vld [vmem:[%s407_s2] sm:$0xff]  ;;  %v86_v29 = vld [vmem:[%s408_s0 + $0x8] sm:$0x1f]  ;;  %v88_v36 = vld [vmem:[%s408_s0 + $0x18] sm:$0x1f]  ;;  %vm182_vm5 = vcmask 1043459  }
   0x4   :  { %v38_v6 = vsub.s32 1, %v338_v4  ;;  %v31_v7 = vsub.s32 0, %v338_v4  ;;  %v45_v12 = vsub.s32 2, %v338_v4  ;;  %v52_v13 = vsub.s32 3, %v338_v4  ;;  %288 = vmatpush3.msra.mxu0 %v160_v25  ;;  %v85_v30 = vld [vmem:[%s408_s0] sm:$0x1f] }
   0x5   :  { %v59_v16 = vsub.s32 4, %v338_v4  ;;  %v66_v17 = vsub.s32 5, %v338_v4  ;;  %v73_v20 = vsub.s32 6, %v338_v4  ;;  %v80_v21 = vsub.s32 7, %v338_v4  ;;  %289 = vmatprep.subr.mxu0 %v302_v2  ;;  %v89_v47 = vld [vmem:[%s408_s0 + $0x20] sm:$0x1f] }
   0x6   :  { %290 = vmatpush3.msra.mxu0 %v159_v26  ;;  %v90_v48 = vld [vmem:[%s408_s0 + $0x28] sm:$0x1f]  ;;  %v91_v63 = vld [vmem:[%s408_s0 + $0x30] sm:$0x1f]  ;;  %v92_v0 = vld [vmem:[%s408_s0 + $0x38] sm:$0x1f] }
   0x7   :  { %291 = vmatprep.subr.mxu0 %v302_v2  ;;  %vm184_vm6 = vcmask 1044484   ;;  %vm186_vm7 = vcmask 1045509   ;;  %vm188_vm8 = vcmask 1046534   ;;  %vm190_vm9 = vcmask 1047559  }
   0x8   :  { %292 = vmatpush3.msra.mxu0 %v158_v27  ;;  %vm192_vm10 = vcmask 261120   ;;  %vm270_vm11 = vcmask 130048   ;;  %vm272_vm12 = vcmask 392192  }
  0x7d   :  { %v25_v8 = vpop.permute.xlu0 %24 }
  0x7e   :  { %vm26_vm0 = vcmp.lt.s32.totalorder %v22_v5, %v25_v8 }
  0x7f   :  { %v278_v9 = vsel %vm26_vm0, 1.0, %v302_v2 }
  0x80   :  { %v39_v10 = vrot.slane %v278_v9, %v38_v6  ;;  %v32_v11 = vrot.slane %v278_v9, %v31_v7  ;;  %v46_v14 = vrot.slane %v278_v9, %v45_v12  ;;  %v53_v15 = vrot.slane %v278_v9, %v52_v13 }
  0x81   :  { %v60_v18 = vrot.slane %v278_v9, %v59_v16  ;;  %v67_v19 = vrot.slane %v278_v9, %v66_v17  ;;  %v74_v23 = vrot.slane %v278_v9, %v73_v20  ;;  %v81_v24 = vrot.slane %v278_v9, %v80_v21 }
  0x82   :  { %41 = vbcast.lane.b32.xlu1 %v39_v10, 256  ;;  %34 = vbcast.lane.b32.xlu0 %v32_v11, 256 }
  0x86   :  { %48 = vbcast.lane.b32.xlu1 %v46_v14, 256  ;;  %55 = vbcast.lane.b32.xlu0 %v53_v15, 256 }
  0x8a   :  { %62 = vbcast.lane.b32.xlu1 %v60_v18, 256  ;;  %69 = vbcast.lane.b32.xlu0 %v67_v19, 256 }
  0x8e   :  { %76 = vbcast.lane.b32.xlu1 %v74_v23, 256  ;;  %83 = vbcast.lane.b32.xlu0 %v81_v24, 256 }
  0x92   :  { %267 = vrot.lane.b32.xlu1 %v265_v28, %s304_s29 }
  0xf4   :  { %v42_v31 = vpop.permute.xlu1 %41  ;;  %v35_v32 = vpop.permute.xlu0 %34 }
  0xf5   :  { %v94_v33 = vmul.f32 %v86_v29, %v42_v31  ;;  %v93_v34 = vmul.f32 %v85_v30, %v35_v32 }
  0xf7   :  { %v109_v37 = vsel %vm101_vm2, %v94_v33, 0.0  ;;  %v102_v38 = vsel %vm101_vm2, %v93_v34, 0.0 }
  0xf8   :  { %v110_v39 = vrot.slane %v109_v37, 4  ;;  %v103_v40 = vrot.slane %v102_v38, 4  ;;  %v49_v41 = vpop.permute.xlu1 %48  ;;  %v56_v42 = vpop.permute.xlu0 %55 }
  0xf9   :  { %v95_v43 = vmul.f32 %v87_v35, %v49_v41  ;;  %v96_v44 = vmul.f32 %v88_v36, %v56_v42 }
  0xfa   :  { %v111_v45 = vadd.f32 %v110_v39, %v109_v37  ;;  %v104_v46 = vadd.f32 %v103_v40, %v102_v38 }
  0xfb   :  { %v116_v49 = vsel %vm101_vm2, %v95_v43, 0.0  ;;  %v123_v50 = vsel %vm101_vm2, %v96_v44, 0.0 }
  0xfc   :  { %v112_v51 = vrot.slane %v111_v45, 2  ;;  %v105_v52 = vrot.slane %v104_v46, 2  ;;  %v117_v53 = vrot.slane %v116_v49, 4  ;;  %v124_v54 = vrot.slane %v123_v50, 4  ;;  %v63_v55 = vpop.permute.xlu1 %62  ;;  %v70_v56 = vpop.permute.xlu0 %69 }
  0xfd   :  { %v97_v57 = vmul.f32 %v89_v47, %v63_v55  ;;  %v98_v58 = vmul.f32 %v90_v48, %v70_v56 }
  0xfe   :  { %v113_v59 = vadd.f32 %v112_v51, %v111_v45  ;;  %v106_v60 = vadd.f32 %v105_v52, %v104_v46  ;;  %v118_v61 = vadd.f32 %v117_v53, %v116_v49  ;;  %v125_v62 = vadd.f32 %v124_v54, %v123_v50  ;;  %v162_v54 = vld [vmem:[%s409_s4] sm:$0x1] }
  0xff   :  { %v130_v1 = vsel %vm101_vm2, %v97_v57, 0.0  ;;  %v137_v2 = vsel %vm101_vm2, %v98_v58, 0.0  ;;  %v163_v55 = vmul.f32 5.0, %v162_v54 }
 0x100   :  { %v114_v3 = vrot.slane %v113_v59, 1  ;;  %v107_v5 = vrot.slane %v106_v60, 1  ;;  %v119_v6 = vrot.slane %v118_v61, 2  ;;  %v126_v8 = vrot.slane %v125_v62, 2  ;;  %v77_v9 = vpop.permute.xlu1 %76  ;;  %v84_v10 = vpop.permute.xlu0 %83 }
 0x101   :  { %v131_v11 = vrot.slane %v130_v1, 4  ;;  %v138_v12 = vrot.slane %v137_v2, 4  ;;  %v99_v13 = vmul.f32 %v91_v63, %v77_v9  ;;  %v100_v14 = vmul.f32 %v92_v0, %v84_v10 }
 0x102   :  { %v115_v15 = vadd.f32 %v114_v3, %v113_v59  ;;  %v120_v16 = vadd.f32 %v119_v6, %v118_v61  ;;  %v127_v17 = vadd.f32 %v126_v8, %v125_v62  ;;  %v108_v22 = vadd.f32 %v107_v5, %v106_v60 }
 0x103   :  { %v132_v18 = vadd.f32 %v131_v11, %v130_v1  ;;  %v139_v19 = vadd.f32 %v138_v12, %v137_v2  ;;  %v144_v20 = vsel %vm101_vm2, %v99_v13, 0.0  ;;  %v151_v21 = vsel %vm101_vm2, %v100_v14, 0.0 }
 0x104   :  { %v121_v23 = vrot.slane %v120_v16, 1  ;;  %v128_v24 = vrot.slane %v127_v17, 1  ;;  %v145_v25 = vrot.slane %v144_v20, 4  ;;  %v152_v28 = vrot.slane %v151_v21, 4  ;;  %v268_v58 = vpop.permute.xlu1 %267 }
 0x105   :  { %v133_v26 = vrot.slane %v132_v18, 2  ;;  %v140_v27 = vrot.slane %v139_v19, 2  ;;  %v179_v34 = vsel %vm178_vm3, %v115_v15, %v108_v22  ;;  %v168_v56 = vrot.slane %v163_v55, %v31_v7 }
 0x106   :  { %v122_v29 = vadd.f32 %v121_v23, %v120_v16  ;;  %v146_v30 = vadd.f32 %v145_v25, %v144_v20  ;;  %v153_v33 = vadd.f32 %v152_v28, %v151_v21  ;;  %v129_v35 = vadd.f32 %v128_v24, %v127_v17 }
 0x107   :  { %v134_v31 = vadd.f32 %v133_v26, %v132_v18  ;;  %v141_v32 = vadd.f32 %v140_v27, %v139_v19 }
 0x108   :  { %v147_v36 = vrot.slane %v146_v30, 2  ;;  %v181_v37 = vsel %vm180_vm4, %v122_v29, %v179_v34  ;;  %v154_v40 = vrot.slane %v153_v33, 2 }
 0x109   :  { %v135_v38 = vrot.slane %v134_v31, 1  ;;  %v142_v39 = vrot.slane %v141_v32, 1  ;;  %v183_v45 = vsel %vm182_vm5, %v129_v35, %v181_v37 }
 0x10a   :  { %v148_v41 = vadd.f32 %v147_v36, %v146_v30  ;;  %v155_v44 = vadd.f32 %v154_v40, %v153_v33 }
 0x10b   :  { %v136_v42 = vadd.f32 %v135_v38, %v134_v31  ;;  %v143_v43 = vadd.f32 %v142_v39, %v141_v32 }
 0x10c   :  { %v149_v46 = vrot.slane %v148_v41, 1  ;;  %v156_v47 = vrot.slane %v155_v44, 1 }
 0x10d   :  { %v185_v48 = vsel %vm184_vm6, %v136_v42, %v183_v45 }
 0x10e   :  { %v150_v49 = vadd.f32 %v149_v46, %v148_v41  ;;  %v157_v50 = vadd.f32 %v156_v47, %v155_v44  ;;  %v187_v51 = vsel %vm186_vm7, %v143_v43, %v185_v48 }
 0x110   :  { %v189_v52 = vsel %vm188_vm8, %v150_v49, %v187_v51 }
 0x111   :  { %v191_v53 = vsel %vm190_vm9, %v157_v50, %v189_v52 }
 0x112   :  { %294 = vmatmul.mubr.msk.f32.vlgmr.msra.gmra.mxu0 %vm192_vm10, %v191_v53 }
 0x1d2   :  { %v261_v57 = vpop.f32.mrf.mxu0 }
 0x1d3   :  { %v262_v59 = vadd.f32 %v261_v57, %v168_v56 }
 0x1d4   :  { %v295_v60 = vpop.f32.mrf.mxu0 }
 0x1d5   :  { %v271_v61 = vsel %vm270_vm11, %v262_v59, %v268_v58 }
 0x1d6   :  { %273 = vst.msk [vmem:[%s410_s5] sm:$0xff] %vm272_vm12, %v271_v61 }

// kernel: inter_context_forward.3
= control target key start
LH: loop header
LB: loop body
LE: loop exit
PB: predicated region body
PF: predicated region fallthrough
CT: control target
= control target key end

     0   :  { %s2372_s0 = inlined_call_operand.vmem [shape: s32[2], index: 0, kind: input, shape index: {}]   ;;  %s2373_s1 = inlined_call_operand.vmem [shape: f32[2,4,48], index: 1, kind: input, shape index: {}]   ;;  %s2374_s2 = inlined_call_operand.vmem [shape: f32[2,4,4], index: 2, kind: input, shape index: {}]   ;;  %s2375_s3 = inlined_call_operand.vmem [shape: f32[160,144], index: 3, kind: input, shape index: {}]   ;;  %s2376_s4 = inlined_call_operand.vmem [shape: f32[8,144], index: 4, kind: input, shape index: {}]   ;;  %s2377_s5 = inlined_call_operand.vmem [shape: f32[2,4,48], index: 5, kind: output, shape index: {}]  }
   0x1   :  { %s10_s20 = sshll.u32 %s2372_s0, 4  ;;  %s11_s20 = int_to_ptr.vmem [resolvable:$true] %s10_s20 }
   0x2   :  { %s2002_s21 = scalar_lea.vmem %s11_s20, 16  ;;  %p2007_p1 = scmp.lt.s32.totalorder %s11_s20, %s11_s20 }
   0x3   :  { %p2003_p0 = scmp.ne.s32.totalorder %s11_s20, %s2002_s21  ;;  %p2008_p2 = scmp.lt.s32.totalorder %s2002_s21, %s2002_s21 }
   0x5   :  { %p2009_p3 = por %p2008_p2, %p2007_p1 }
   0x7   :  { %p2010_p4 = pnand %p2009_p3, %p2003_p0 }
   0x9   :  { %2013 = shalt.err (!%p2010_p4)  }
   0xa   :  { %s2024_s22 = smov [#allocation3]  }
   0xb   :  { %13 = dma.vmem_to_smem %s11_s20, 16, %s2024_s22, [#allocation2] }
   0xc   :  { %2018 = dma.done.wait [#allocation2], 16 }
   0xd   :  { %2019 = vsyncadd [#allocation2], 4294967280 }
   0xe   :  { %15 = sfence }
   0xf   :  { %s2075_s23 = smov 0  }
  0x10 LB: > { %s2081_s0 = sadd.s32 4294967295, %s2022_s23   ;;  %p1768_p5 = scmp.ge.s32.totalorder %s2022_s23, 1  ;;  %s2022_s23 = sphi %s2075_s23, %s21_s23  }
  0x11   : > { %p177_p6 = scmp.lt.s32.totalorder %s2022_s23, 3 }
  0x13   : > { %p178_p7 = pnand %p1768_p5, %p177_p6 }
  0x14   : > { %p205_p8 = scmp.lt.s32.totalorder (!%p178_p7), %s2081_s0, 1  ;;  %s2027_s6 = smov (!%p178_p7), 80  }
  0x15   : > { %181 = sbr.rel (%p178_p7) target bundleno = 3415 (0xd57), region = 36  ;;  %s2028_s7 = smov (!%p178_p7), 116  }
  0x16   : > { %s2029_s8 = smov (!%p178_p7), 68   ;;  %s219_s12 = sld [smem:[#allocation3 + %s2081_s0]] (!%p178_p7) }
  0x17   : > { %s2032_s13 = smov (!%p178_p7), 20   ;;  %s2033_s15 = smov (!%p178_p7), 104  }
  0x18   : > { %s2034_s16 = smov (!%p178_p7), 56   ;;  %s2035_s17 = smov (!%p178_p7), 8  }
  0x19   : > { %s2036_s18 = smov (!%p178_p7), 44   ;;  %s2037_s19 = smov (!%p178_p7), 92  }
  0x1a   : > { %v273_v0 = vld [vmem:[%s2375_s3 + $0x58] sm:$0xff]  ;;  %v272_v1 = vld [vmem:[%s2375_s3 + $0x50] sm:$0xff]  ;;  %v271_v2 = vld [vmem:[%s2375_s3 + $0x48] sm:$0xff]  ;;  %v2025_v4 = vmov 0.0   ;;  %s206_s9 = scalar_select %p205_p8, %s2081_s0, 1  ;;  %vm307_vm0 = vcmask 392192   ;;  %v220_v14 = vlaneseq }
  0x1b   : > { %331 = vmatprep.subr.mxu0 %v273_v0  ;;  %v270_v3 = vld [vmem:[%s2375_s3 + $0x40] sm:$0xff]  ;;  %375 = vmatprep.mubr.f32.mxu0 %v2025_v4  ;;  %v269_v5 = vld [vmem:[%s2375_s3 + $0x38] sm:$0xff]  ;;  %v268_v6 = vld [vmem:[%s2375_s3 + $0x30] sm:$0xff]  ;;  %vm2026_vm1 = vmmov 0   ;;  %vm386_vm2 = vcmask 97280   ;;  %vm463_vm8 = vcmask 27648  }
  0x1c   : > { %332 = vmatpush1.msra.mxu0 %v272_v1  ;;  %1843 = vmatprep.subr.mxu1 %v2025_v4  ;;  %v267_v7 = vld [vmem:[%s2375_s3 + $0x28] sm:$0xff]  ;;  %s2110_s14 = sshll.u32 %s206_s9, 2  ;;  %v266_v8 = vld [vmem:[%s2375_s3 + $0x20] sm:$0xff]  ;;  %v265_v9 = vld [vmem:[%s2375_s3 + $0x18] sm:$0xff]  ;;  %v2136_v15 = vshrl.u32 %v220_v14, 7  ;;  %v221_v26 = vand.u32 127, %v220_v14  ;;  %v222_v27 = vstv %s219_s12 }
  0x1d   : > { %333 = vmatprep.subr.mxu0 %v271_v2  ;;  %v264_v10 = vld [vmem:[%s2375_s3 + $0x10] sm:$0xff]  ;;  %s208_s24 = scalar_lea.vmem %s2373_s1, %s2110_s14  ;;  %v263_v11 = vld [vmem:[%s2375_s3 + $0x8] sm:$0xff]  ;;  %v262_v12 = vld [vmem:[%s2375_s3] sm:$0xff]  ;;  %1845 = vmatprep.mubr.msk.f32.mxu1 %vm2026_vm1, %v2025_v4  ;;  %s212_s11 = scalar_lea.vmem %s2374_s2, %s2110_s14  ;;  %v2030_v29 = vmov -1e+09   ;;  %vm493_vm9 = vcmask 1043456  }
  0x1e   : > { %334 = vmatpush1.msra.mxu0 %v270_v3  ;;  %v2131_v13 = vld [vmem:[%s208_s24] sm:$0xf]  ;;  %v299_v16 = vsub.s32 0, %v2136_v15  ;;  %vm223_vm3 = vcmp.lt.s32.totalorder %v221_v26, %v222_v27  ;;  %s2031_s0 = smov 32   ;;  %vm489_vm10 = vcmask 31744   ;;  %vm998_vm11 = vcmask 64512  }
  0x1f   : > { %335 = vmatprep.subr.mxu0 %v269_v5  ;;  %v2146_v17 = vld [vmem:[%s2376_s4] ss:$8 sm:$0x3]  ;;  %s2038_s20 = smov 124   ;;  %s2039_s21 = smov 12   ;;  %vm1413_vm12 = vcmask 195584  }
  0x20   : > { %336 = vmatpush1.msra.mxu0 %v268_v6  ;;  %v300_v18 = vrot.slane %v2146_v17, %v299_v16  ;;  %v218_v22 = vld [vmem:[%s212_s11] sm:$0xf]  ;;  %s2040_s22 = smov 24   ;;  %s2041_s11 = smov 36   ;;  %vm1415_vm13 = vcmask 293888   ;;  %vm1603_vm14 = vcmask 130048  }
  0x21   : > { %337 = vmatprep.subr.mxu0 %v267_v7  ;;  %vm224_vm4 = vcmp.ne.f32.partialorder %v218_v22, 0.0  ;;  %vm1697_vm15 = vcmask 388096  }
  0x22   : > { %338 = vmatpush1.msra.mxu0 %v266_v8  ;;  %vm225_vm6 = vmand %vm224_vm4, %vm223_vm3 }
  0x23   : > { %339 = vmatprep.subr.mxu0 %v265_v9  ;;  %v2173_v30 = vsel %vm225_vm6, 0.0, %v2030_v29 }
  0x24   : > { %340 = vmatpush1.msra.mxu0 %v264_v10 }
  0x25   : > { %341 = vmatprep.subr.mxu0 %v263_v11 }
  0x26   : > { %342 = vmatpush1.msra.mxu0 %v262_v12 }
  0x27   : > { %1772 = vmatmul.mubr.msk.f32.vlgmr.msra.gmra.mxu0 %vm307_vm0, %v2131_v13  ;;  %1858 = vmatprep.subr.mxu0 %v2025_v4 }
  0x28   : > { %1860 = vmatprep.mubr.msk.f32.mxu0 %vm2026_vm1, %v2025_v4 }
  0xe7   : > { %v377_v19 = vpop.f32.mrf.mxu0 }
  0xe8   : > { %v2149_v20 = vadd.f32 %v377_v19, %v300_v18 }
  0xe9   : > { %v2178_v34 = vpop.f32.mrf.mxu0 }
  0xea   : > { %384 = vrot.lane.b32.xlu0 %v2149_v20, %s2027_s6  ;;  %v2153_v21 = vmul.f32 0.28867513, %v2149_v20 }
  0xec   : > { %639 = vrot.lane.b32.xlu1 %v2153_v21, %s2028_s7 }
  0xee   : > { %641 = vrot.lane.b32.xlu0 %v2149_v20, %s2029_s8 }
 0x115   : > { %227 = vxpose.xlu1.b32.start.end [1/1] (short) (narrow) %v218_v22, 8 }
 0x15c   : > { %v385_v23 = vpop.permute.xlu0 %384 }
 0x15d   : > { %1844 = vmatpush3.xpose.msk.msra.mxu1 %vm386_vm2, %v385_v23 }
 0x15e   : > { %1848 = vmatprep.subr.mxu1 %v2025_v4  ;;  %v640_v25 = vpop.permute.xlu1 %639 }
 0x160   : > { %v642_v24 = vpop.permute.xlu0 %641  ;;  %1846 = vmatmul.mubr.msk.f32.vlgmr.msra.gmra.mxu1 %vm386_vm2, %v2153_v21 }
 0x161   : > { %1859 = vmatpush3.xpose.msk.msra.mxu0 %vm386_vm2, %v642_v24  ;;  %1850 = vmatprep.mubr.msk.f32.mxu1 %vm2026_vm1, %v2025_v4 }
 0x162   : > { %1868 = vmatprep.subr.mxu0 %v2025_v4 }
 0x164   : > { %1861 = vmatmul.mubr.msk.f32.vlgmr.msra.gmra.mxu0 %vm386_vm2, %v640_v25 }
 0x165   : > { %1870 = vmatprep.mubr.msk.f32.mxu0 %vm2026_vm1, %v2025_v4 }
 0x191   : > { %v243_v28 = vpop.trf.xlu1 }
 0x192   : > { %vm259_vm5 = vcmp.ne.f32.partialorder %v243_v28, 0.0 }
 0x193   : > { %vm260_vm7 = vmand %vm259_vm5, %vm223_vm3 }
 0x194   : > { %v2175_v31 = vsel %vm260_vm7, 0.0, %v2030_v29 }
 0x220   : > { %v458_v32 = vpop.f32.mrf.mxu1 }
 0x221   : > { %v462_v33 = vadd.f32 %v458_v32, %v2173_v30  ;;  %v475_v36 = vadd.f32 %v458_v32, %v2175_v31 }
 0x222   : > { %v1847_v35 = vpop.f32.mrf.mxu1 }
 0x223   : > { %v464_v37 = vsel %vm463_vm8, %v462_v33, -inf  ;;  %v476_v41 = vsel %vm463_vm8, %v475_v36, -inf  ;;  %v303_v35 = vsub.s32 1, %v2136_v15 }
 0x224   : > { %v713_v38 = vpop.f32.mrf.mxu0  ;;  %465 = vmax.xlane.f32.xlu0 %v464_v37 }
 0x225   : > { %v717_v40 = vadd.f32 %v713_v38, %v2173_v30  ;;  %v729_v60 = vadd.f32 %v713_v38, %v2175_v31  ;;  %v304_v37 = vrot.slane %v2146_v17, %v303_v35  ;;  %v275_v35 = vld [vmem:[%s2375_s3 + $0x70] sm:$0xff] }
 0x226   : > { %v1862_v39 = vpop.f32.mrf.mxu0 }
 0x227   : > { %v718_v42 = vsel %vm463_vm8, %v717_v40, -inf  ;;  %v730_v61 = vsel %vm463_vm8, %v729_v60, -inf  ;;  %v2232_v38 = vadd.f32 %v2178_v34, %v304_v37 }
 0x228   : > { %477 = vmax.xlane.f32.xlu0 %v476_v41 }
 0x22c   : > { %719 = vmax.xlane.f32.xlu0 %v718_v42 }
 0x242   : > { %487 = vrot.lane.b32.xlu0 %v2149_v20, %s2031_s0 }
 0x246   : > { %741 = vrot.lane.b32.xlu0 %v2149_v20, %s2032_s13 }
 0x2ad   : > { %v466_v43 = vpop.xlane.xlu0 %465 }
 0x2ae   : > { %v467_v44 = vsub.f32 %v462_v33, %v466_v43 }
 0x2b0   : > { %v468_v45 = vmul.f32 1.442695, %v467_v44 }
 0x2b1   : > { %v478_v46 = vpop.xlane.xlu0 %477 }
 0x2b2   : > { %1966 = vpow2.f32 %v468_v45  ;;  %v479_v47 = vsub.f32 %v475_v36, %v478_v46 }
 0x2b4   : > { %v480_v48 = vmul.f32 1.442695, %v479_v47 }
 0x2b5   : > { %v720_v49 = vpop.xlane.xlu0 %719 }
 0x2b6   : > { %1968 = vpow2.f32 %v480_v48  ;;  %v721_v50 = vsub.f32 %v717_v40, %v720_v49 }
 0x2b8   : > { %v722_v51 = vmul.f32 1.442695, %v721_v50 }
 0x2b9   : > { %v488_v52 = vpop.permute.xlu0 %487 }
 0x2ba   : > { %1970 = vpow2.f32 %v722_v51  ;;  %1849 = vmatpush3.msk.msra.mxu1 %vm493_vm9, %v488_v52 }
 0x2bb   : > { %1853 = vmatprep.subr.mxu1 %v2025_v4 }
 0x2bd   : > { %v742_v53 = vpop.permute.xlu0 %741 }
 0x2be   : > { %1869 = vmatpush3.msk.msra.mxu0 %vm493_vm9, %v742_v53 }
 0x2bf   : > { %v1967_v54 = vpop.eup %1966  ;;  %1878 = vmatprep.subr.mxu0 %v2025_v4 }
 0x2c0   : > { %v470_v55 = vsel %vm463_vm8, %v1967_v54, 0.0 }
 0x2c1   : > { %471 = vadd.xlane.f32.xlu1 %v470_v55 }
 0x2c3   : > { %v1969_v56 = vpop.eup %1968 }
 0x2c4   : > { %v482_v57 = vsel %vm463_vm8, %v1969_v56, 0.0 }
 0x2c5   : > { %483 = vadd.xlane.f32.xlu0 %v482_v57 }
 0x2c7   : > { %v1971_v58 = vpop.eup %1970 }
 0x2c8   : > { %v724_v59 = vsel %vm463_vm8, %v1971_v58, 0.0 }
 0x2c9   : > { %725 = vadd.xlane.f32.xlu0 %v724_v59 }
 0x2d2   : > { %891 = vrot.lane.b32.xlu1 %v2153_v21, %s2033_s15 }
 0x2df   : > { %893 = vrot.lane.b32.xlu0 %v2149_v20, %s2034_s16 }
 0x2fe   : > { %731 = vmax.xlane.f32.xlu0 %v730_v61 }
 0x34a   : > { %v472_v62 = vpop.xlane.xlu1 %471 }
 0x34b   : > { %1972 = vrcp.f32 %v472_v62 }
 0x34e   : > { %v484_v63 = vpop.xlane.xlu0 %483  ;;  %v892_v9 = vpop.permute.xlu1 %891 }
 0x34f   : > { %1974 = vrcp.f32 %v484_v63 }
 0x352   : > { %v726_v0 = vpop.xlane.xlu0 %725 }
 0x353   : > { %1976 = vrcp.f32 %v726_v0 }
 0x356   : > { %v894_v8 = vpop.permute.xlu0 %893 }
 0x358   : > { %v1973_v1 = vpop.eup %1972 }
 0x359   : > { %v474_v2 = vmul.f32 %v1973_v1, %v1967_v54 }
 0x35b   : > { %1851 = vmatmul.mubr.msk.f32.vlgmr.msra.gmra.mxu1 %vm489_vm10, %v474_v2 }
 0x35c   : > { %v1975_v3 = vpop.eup %1974  ;;  %1854 = vmatpush3.msk.msra.mxu1 %vm493_vm9, %v488_v52  ;;  %1855 = vmatprep.mubr.msk.f32.mxu1 %vm2026_vm1, %v2025_v4 }
 0x35d   : > { %1863 = vmatprep.subr.mxu1 %v2025_v4  ;;  %v486_v5 = vmul.f32 %v1975_v3, %v1969_v56 }
 0x35f   : > { %1856 = vmatmul.mubr.msk.f32.vlgmr.msra.gmra.mxu1 %vm489_vm10, %v486_v5 }
 0x360   : > { %v1977_v6 = vpop.eup %1976  ;;  %1864 = vmatpush3.msk.msra.mxu1 %vm493_vm9, %v742_v53  ;;  %1865 = vmatprep.mubr.msk.f32.mxu1 %vm2026_vm1, %v2025_v4 }
 0x361   : > { %1873 = vmatprep.subr.mxu1 %v2025_v4  ;;  %v728_v7 = vmul.f32 %v1977_v6, %v1971_v58 }
 0x363   : > { %1866 = vmatmul.mubr.msk.f32.vlgmr.msra.gmra.mxu1 %vm489_vm10, %v728_v7 }
 0x364   : > { %1874 = vmatpush3.xpose.msk.msra.mxu1 %vm386_vm2, %v894_v8  ;;  %1875 = vmatprep.mubr.msk.f32.mxu1 %vm2026_vm1, %v2025_v4 }
 0x365   : > { %1883 = vmatprep.subr.mxu1 %v2025_v4 }
 0x367   : > { %1876 = vmatmul.mubr.msk.f32.vlgmr.msra.gmra.mxu1 %vm386_vm2, %v892_v9 }
 0x368   : > { %1885 = vmatprep.mubr.msk.f32.mxu1 %vm2026_vm1, %v2025_v4 }
 0x387   : > { %v732_v10 = vpop.xlane.xlu0 %731 }
 0x388   : > { %v733_v11 = vsub.f32 %v729_v60, %v732_v10 }
 0x38a   : > { %v734_v12 = vmul.f32 1.442695, %v733_v11 }
 0x38c   : > { %1978 = vpow2.f32 %v734_v12 }
 0x399   : > { %v1979_v14 = vpop.eup %1978 }
 0x39a   : > { %v736_v16 = vsel %vm463_vm8, %v1979_v14, 0.0 }
 0x39b   : > { %737 = vadd.xlane.f32.xlu0 %v736_v16 }
 0x3b1   : > { %994 = vrot.lane.b32.xlu0 %v2149_v20, %s2035_s17 }
 0x41b   : > { %v2218_v18 = vpop.f32.mrf.mxu1 }
 0x41d   : > { %v1852_v19 = vpop.f32.mrf.mxu1 }
 0x41f   : > { %v2220_v22 = vpop.f32.mrf.mxu1 }
 0x421   : > { %v1857_v23 = vpop.f32.mrf.mxu1 }
 0x423   : > { %v2222_v24 = vpop.f32.mrf.mxu1 }
 0x424   : > { %v738_v25 = vpop.xlane.xlu0 %737 }
 0x425   : > { %1980 = vrcp.f32 %v738_v25  ;;  %v1867_v26 = vpop.f32.mrf.mxu1 }
 0x427   : > { %v965_v27 = vpop.f32.mrf.mxu1 }
 0x428   : > { %v969_v28 = vadd.f32 %v965_v27, %v2173_v30  ;;  %v995_v42 = vpop.permute.xlu0 %994  ;;  %v981_v46 = vadd.f32 %v965_v27, %v2175_v31 }
 0x429   : > { %v1877_v29 = vpop.f32.mrf.mxu1 }
 0x42a   : > { %v970_v32 = vsel %vm463_vm8, %v969_v28, -inf  ;;  %v982_v47 = vsel %vm463_vm8, %v981_v46, -inf  ;;  %v279_v29 = vld [vmem:[%s2375_s3 + $0xb0] sm:$0xff] }
 0x42b   : > { %971 = vmax.xlane.f32.xlu1 %v970_v32  ;;  %v278_v32 = vld [vmem:[%s2375_s3 + $0xa0] sm:$0xff] }
 0x432   : > { %v1981_v33 = vpop.eup %1980 }
 0x433   : > { %v740_v36 = vmul.f32 %v1981_v33, %v1979_v14  ;;  %v277_v33 = vld [vmem:[%s2375_s3 + $0x90] sm:$0xff] }
 0x435   : > { %1871 = vmatmul.mubr.msk.f32.vlgmr.msra.gmra.mxu0 %vm489_vm10, %v740_v36  ;;  %v274_v36 = vld [vmem:[%s2375_s3 + $0x60] sm:$0xff] }
 0x436   : > { %1880 = vmatprep.mubr.msk.f32.mxu0 %vm2026_vm1, %v2025_v4 }
 0x43c   : > { %996 = vrot.lane.b32.xlu1 %v2232_v38, %s2035_s17 }
 0x4b4   : > { %v972_v39 = vpop.xlane.xlu1 %971 }
 0x4b5   : > { %v973_v40 = vsub.f32 %v969_v28, %v972_v39 }
 0x4b7   : > { %v974_v41 = vmul.f32 1.442695, %v973_v40 }
 0x4b8   : > { %v997_v43 = vpop.permute.xlu1 %996 }
 0x4b9   : > { %1982 = vpow2.f32 %v974_v41  ;;  %v999_v15 = vsel %vm998_vm11, %v995_v42, %v997_v43 }
 0x4ba   : > { %1879 = vmatpush3.msk.msra.mxu0 %vm493_vm9, %v999_v15  ;;  %1884 = vmatpush3.msk.msra.mxu1 %vm493_vm9, %v999_v15 }
 0x4bb   : > { %1888 = vmatprep.subr.mxu0 %v2025_v4  ;;  %1893 = vmatprep.subr.mxu1 %v2025_v4 }
 0x4c6   : > { %v1983_v17 = vpop.eup %1982 }
 0x4c7   : > { %v976_v34 = vsel %vm463_vm8, %v1983_v17, 0.0 }
 0x4c8   : > { %977 = vadd.xlane.f32.xlu0 %v976_v34 }
 0x4de   : > { %1150 = vrot.lane.b32.xlu0 %v2149_v20, %s2036_s18 }
 0x4e2   : > { %1148 = vrot.lane.b32.xlu0 %v2153_v21, %s2037_s19 }
 0x4f5   : > { %v887_v44 = vpop.f32.mrf.mxu0 }
 0x4f7   : > { %v1872_v45 = vpop.f32.mrf.mxu0 }
 0x501   : > { %983 = vmax.xlane.f32.xlu0 %v982_v47 }
 0x551   : > { %v978_v48 = vpop.xlane.xlu0 %977 }
 0x552   : > { %1984 = vrcp.f32 %v978_v48 }
 0x555   : > { %v1151_v50 = vpop.permute.xlu0 %1150 }
 0x559   : > { %v1149_v20 = vpop.permute.xlu0 %1148 }
 0x55f   : > { %v1985_v49 = vpop.eup %1984 }
 0x560   : > { %v980_v51 = vmul.f32 %v1985_v49, %v1983_v17 }
 0x562   : > { %1881 = vmatmul.mubr.msk.f32.vlgmr.msra.gmra.mxu0 %vm489_vm10, %v980_v51 }
 0x563   : > { %1889 = vmatpush3.xpose.msk.msra.mxu0 %vm386_vm2, %v1151_v50  ;;  %1890 = vmatprep.mubr.msk.f32.mxu0 %vm2026_vm1, %v2025_v4 }
 0x564   : > { %1898 = vmatprep.subr.mxu0 %v2025_v4 }
 0x566   : > { %1891 = vmatmul.mubr.msk.f32.vlgmr.msra.gmra.mxu0 %vm386_vm2, %v1149_v20  ;;  %v289_v20 = vld [vmem:[%s2376_s4 + $0x1] ss:$0 sm:$0xff] }
 0x567   : > { %1900 = vmatprep.mubr.msk.f32.mxu0 %vm2026_vm1, %v2025_v4 }
 0x58a   : > { %v984_v21 = vpop.xlane.xlu0 %983 }
 0x58b   : > { %v985_v52 = vsub.f32 %v981_v46, %v984_v21 }
 0x58d   : > { %v986_v53 = vmul.f32 1.442695, %v985_v52 }
 0x58f   : > { %1986 = vpow2.f32 %v986_v53 }
 0x59c   : > { %v1987_v62 = vpop.eup %1986 }
 0x59d   : > { %v988_v63 = vsel %vm463_vm8, %v1987_v62, 0.0 }
 0x622   : > { %v1071_v54 = vpop.f32.mrf.mxu0 }
 0x624   : > { %v1882_v55 = vpop.f32.mrf.mxu0 }
 0x626   : > { %v1222_v56 = vpop.f32.mrf.mxu0 }
 0x627   : > { %v1226_v57 = vadd.f32 %v1222_v56, %v2173_v30  ;;  %v1238_v58 = vadd.f32 %v1222_v56, %v2175_v31 }
 0x628   : > { %v1892_v59 = vpop.f32.mrf.mxu0 }
 0x629   : > { %v1239_v60 = vsel %vm463_vm8, %v1238_v58, -inf  ;;  %v1227_v61 = vsel %vm463_vm8, %v1226_v57, -inf }
 0x62a   : > { %1240 = vmax.xlane.f32.xlu1 %v1239_v60  ;;  %1228 = vmax.xlane.f32.xlu0 %v1227_v61  ;;  %v285_v61 = vld [vmem:[%s2375_s3 + $0x110] sm:$0xff] }
 0x62e   : > { %989 = vadd.xlane.f32.xlu0 %v988_v63  ;;  %v282_v63 = vld [vmem:[%s2375_s3 + $0xe0] sm:$0xff] }
 0x6b3   : > { %v1241_v0 = vpop.xlane.xlu1 %1240  ;;  %v1229_v1 = vpop.xlane.xlu0 %1228 }
 0x6b4   : > { %v1242_v2 = vsub.f32 %v1238_v58, %v1241_v0  ;;  %v1230_v3 = vsub.f32 %v1226_v57, %v1229_v1  ;;  %v281_v0 = vld [vmem:[%s2375_s3 + $0xd0] sm:$0xff]  ;;  %v280_v1 = vld [vmem:[%s2375_s3 + $0xc0] sm:$0xff] }
 0x6b6   : > { %v1243_v5 = vmul.f32 1.442695, %v1242_v2  ;;  %v1231_v6 = vmul.f32 1.442695, %v1230_v3 }
 0x6b7   : > { %v990_v30 = vpop.xlane.xlu0 %989 }
 0x6b8   : > { %1988 = vpow2.f32 %v1243_v5 }
 0x6b9   : > { %1990 = vpow2.f32 %v1231_v6 }
 0x6ba   : > { %1992 = vrcp.f32 %v990_v30  ;;  %v292_v30 = vld [vmem:[%s2376_s4 + $0x4] ss:$0 sm:$0xff] }
 0x6c5   : > { %v1989_v31 = vpop.eup %1988 }
 0x6c6   : > { %v1991_v7 = vpop.eup %1990  ;;  %v1245_v8 = vsel %vm463_vm8, %v1989_v31, 0.0 }
 0x6c7   : > { %v1993_v9 = vpop.eup %1992  ;;  %1246 = vadd.xlane.f32.xlu1 %v1245_v8  ;;  %v1233_v10 = vsel %vm463_vm8, %v1991_v7, 0.0 }
 0x6c8   : > { %1234 = vadd.xlane.f32.xlu0 %v1233_v10  ;;  %v992_v11 = vmul.f32 %v1993_v9, %v1987_v62  ;;  %v283_v62 = vld [vmem:[%s2375_s3 + $0xf0] sm:$0xff] }
 0x6c9   : > { %v287_v10 = vld [vmem:[%s2375_s3 + $0x130] sm:$0xff] }
 0x6ca   : > { %1886 = vmatmul.mubr.msk.f32.vlgmr.msra.gmra.mxu1 %vm489_vm10, %v992_v11  ;;  %v286_v11 = vld [vmem:[%s2375_s3 + $0x120] sm:$0xff] }
 0x6cb   : > { %1895 = vmatprep.mubr.msk.f32.mxu1 %vm2026_vm1, %v2025_v4 }
 0x6d8   : > { %1250 = vrot.lane.b32.xlu1 %v2232_v38, %s2038_s20  ;;  %s216_s20 = scalar_lea.vmem %s2377_s5, %s2110_s14 }
 0x6de   : > { %1418 = vrot.lane.b32.xlu0 %v887_v44, %s2039_s21 }
 0x750   : > { %v1247_v12 = vpop.xlane.xlu1 %1246 }
 0x751   : > { %1994 = vrcp.f32 %v1247_v12  ;;  %v1235_v14 = vpop.xlane.xlu0 %1234  ;;  %v290_v12 = vld [vmem:[%s2376_s4 + $0x2] ss:$0 sm:$0xff] }
 0x752   : > { %1996 = vrcp.f32 %v1235_v14 }
 0x754   : > { %v1251_v16 = vpop.permute.xlu1 %1250 }
 0x755   : > { %1894 = vmatpush3.msk.msra.mxu1 %vm493_vm9, %v1251_v16  ;;  %1899 = vmatpush3.msk.msra.mxu0 %vm493_vm9, %v1251_v16  ;;  %v1419_v43 = vpop.permute.xlu0 %1418 }
 0x756   : > { %1903 = vmatprep.subr.mxu1 %v2025_v4  ;;  %1918 = vmatprep.subr.mxu0 %v2025_v4  ;;  %v1429_v15 = vsel %vm386_vm2, %v2220_v22, %v1419_v43  ;;  %v1509_v22 = vrot.slane %v2131_v13, 4  ;;  %v295_v43 = vld [vmem:[%s2376_s4 + $0x7] ss:$0 sm:$0xff] }
 0x75e   : > { %v1995_v19 = vpop.eup %1994 }
 0x75f   : > { %v1997_v23 = vpop.eup %1996  ;;  %v1249_v25 = vmul.f32 %v1995_v19, %v1989_v31 }
 0x760   : > { %v1237_v26 = vmul.f32 %v1997_v23, %v1991_v7  ;;  %v293_v7 = vld [vmem:[%s2376_s4 + $0x5] ss:$0 sm:$0xff] }
 0x761   : > { %1901 = vmatmul.mubr.msk.f32.vlgmr.msra.gmra.mxu0 %vm489_vm10, %v1249_v25  ;;  %v291_v25 = vld [vmem:[%s2376_s4 + $0x3] ss:$0 sm:$0xff] }
 0x762   : > { %1896 = vmatmul.mubr.msk.f32.vlgmr.msra.gmra.mxu1 %vm489_vm10, %v1237_v26  ;;  %1930 = vmatprep.mubr.msk.f32.mxu0 %vm2026_vm1, %v2025_v4 }
 0x763   : > { %1915 = vmatprep.mubr.msk.f32.mxu1 %vm2026_vm1, %v2025_v4  ;;  %1904 = vmatpush3.msra.mxu1 %v279_v29 }
 0x764   : > { %1905 = vmatprep.subr.mxu1 %v2025_v4  ;;  %1919 = vmatpush3.msra.mxu0 %v285_v61 }
 0x765   : > { %1906 = vmatpush3.msra.mxu1 %v278_v32  ;;  %1920 = vmatprep.subr.mxu0 %v2025_v4 }
 0x766   : > { %1907 = vmatprep.subr.mxu1 %v2025_v4 }
 0x767   : > { %1908 = vmatpush3.msra.mxu1 %v277_v33 }
 0x768   : > { %1909 = vmatprep.subr.mxu1 %v2025_v4 }
 0x78a   : > { %v1144_v27 = vpop.f32.mrf.mxu1 }
 0x78b   : > { %1422 = vrot.lane.b32.xlu1 %v1144_v27, %s2040_s22 }
 0x78c   : > { %v1887_v28 = vpop.f32.mrf.mxu1 }
 0x78f   : > { %1401 = vrot.lane.b32.xlu1 %v2222_v24, %s2039_s21  ;;  %v276_v24 = vld [vmem:[%s2375_s3 + $0x80] sm:$0xff] }
 0x790   : > { %1910 = vmatpush3.msra.mxu1 %v276_v24 }
 0x791   : > { %1911 = vmatprep.subr.mxu1 %v2025_v4 }
 0x792   : > { %1912 = vmatpush3.msra.mxu1 %v275_v35 }
 0x793   : > { %1405 = vrot.lane.b32.xlu1 %v1071_v54, %s2040_s22  ;;  %1913 = vmatprep.subr.mxu1 %v2025_v4 }
 0x794   : > { %1914 = vmatpush3.msra.mxu1 %v274_v36 }
 0x795   : > { %1933 = vmatprep.subr.mxu1 %v2025_v4 }
 0x7fd   : > { %v1423_v41 = vpop.permute.xlu1 %1422 }
 0x7fe   : > { %v1430_v17 = vsel %vm1413_vm12, %v1429_v15, %v1423_v41  ;;  %v294_v41 = vld [vmem:[%s2376_s4 + $0x6] ss:$0 sm:$0xff] }
 0x801   : > { %v1402_v42 = vpop.permute.xlu1 %1401 }
 0x802   : > { %v1412_v46 = vsel %vm386_vm2, %v2218_v18, %v1402_v42  ;;  %v1511_v18 = vsel %vm493_vm9, %v2131_v13, %v1509_v22  ;;  %v284_v13 = vld [vmem:[%s2375_s3 + $0x100] sm:$0xff] }
 0x803   : > { %1921 = vmatpush3.msra.mxu0 %v284_v13 }
 0x804   : > { %1922 = vmatprep.subr.mxu0 %v2025_v4 }
 0x805   : > { %v1406_v44 = vpop.permute.xlu1 %1405  ;;  %1923 = vmatpush3.msra.mxu0 %v283_v62 }
 0x806   : > { %v1414_v47 = vsel %vm1413_vm12, %v1412_v46, %v1406_v44  ;;  %1924 = vmatprep.subr.mxu0 %v2025_v4 }
 0x807   : > { %1925 = vmatpush3.msra.mxu0 %v282_v63 }
 0x808   : > { %1926 = vmatprep.subr.mxu0 %v2025_v4 }
 0x809   : > { %1927 = vmatpush3.msra.mxu0 %v281_v0 }
 0x80a   : > { %1928 = vmatprep.subr.mxu0 %v2025_v4 }
 0x80b   : > { %1929 = vmatpush3.msra.mxu0 %v280_v1 }
 0x821   : > { %v1396_v37 = vpop.f32.mrf.mxu0 }
 0x822   : > { %v1323_v38 = vpop.f32.mrf.mxu1  ;;  %1426 = vrot.lane.b32.xlu0 %v1396_v37, %s2041_s11 }
 0x823   : > { %v1902_v39 = vpop.f32.mrf.mxu0 }
 0x824   : > { %v1897_v40 = vpop.f32.mrf.mxu1 }
 0x826   : > { %1409 = vrot.lane.b32.xlu0 %v1323_v38, %s2041_s11 }
 0x894   : > { %v1427_v34 = vpop.permute.xlu0 %1426 }
 0x895   : > { %v1431_v45 = vsel %vm1415_vm13, %v1430_v17, %v1427_v34 }
 0x896   : > { %v1433_v48 = vrot.slane %v1431_v45, 4 }
 0x898   : > { %v1410_v49 = vpop.permute.xlu0 %1409 }
 0x899   : > { %v1416_v50 = vsel %vm1415_vm13, %v1414_v47, %v1410_v49 }
 0x89a   : > { %v1435_v51 = vsel %vm493_vm9, %v1416_v50, %v1433_v48 }
 0x89b   : > { %1916 = vmatmul.mubr.msk.f32.vlgmr.msra.gmra.mxu1 %vm307_vm0, %v1435_v51 }
 0x89c   : > { %1937 = vmatprep.mubr.msk.f32.mxu1 %vm2026_vm1, %v2025_v4  ;;  %1934 = vmatpush3.msra.mxu1 %v287_v10 }
 0x89d   : > { %1935 = vmatprep.subr.mxu1 %v2025_v4 }
 0x89e   : > { %1936 = vmatpush3.msra.mxu1 %v286_v11 }
 0x95b   : > { %v1505_v21 = vpop.f32.mrf.mxu1 }
 0x95c   : > { %v1506_v52 = vadd.f32 %v1505_v21, %v289_v20 }
 0x95d   : > { %v1917_v53 = vpop.f32.mrf.mxu1 }
 0x95e   : > { %v1512_v54 = vadd.f32 %v1511_v18, %v1506_v52 }
 0x960   : > { %v1513_v55 = vsel %vm307_vm0, %v1512_v54, 0.0 }
 0x961   : > { %1514 = vadd.xlane.f32.xlu1 %v1513_v55 }
 0x9ea   : > { %v1515_v56 = vpop.xlane.xlu1 %1514 }
 0x9eb   : > { %v1517_v57 = vmul.f32 0.020833334, %v1515_v56 }
 0x9ed   : > { %v1518_v58 = vsub.f32 %v1512_v54, %v1517_v57 }
 0x9ef   : > { %v1519_v59 = vmul.f32 %v1518_v58, %v1518_v58 }
 0x9f1   : > { %v1520_v60 = vsel %vm307_vm0, %v1519_v59, 0.0 }
 0x9f2   : > { %1521 = vadd.xlane.f32.xlu0 %v1520_v60 }
 0xa7b   : > { %v1522_v2 = vpop.xlane.xlu0 %1521 }
 0xa7c   : > { %v1523_v3 = vmul.f32 0.020833334, %v1522_v2 }
 0xa7e   : > { %v1524_v5 = vadd.f32 1e-05, %v1523_v3 }
 0xa80   : > { %1998 = vrsqrt.f32 %v1524_v5 }
 0xa8d   : > { %v1999_v6 = vpop.eup %1998 }
 0xa8e   : > { %v1526_v31 = vmul.f32 %v1999_v6, %v1518_v58 }
 0xa90   : > { %v1527_v8 = vmul.f32 %v1526_v31, %v292_v30 }
 0xa92   : > { %v1528_v9 = vadd.f32 %v1527_v8, %v293_v7 }
 0xa94   : > { %1931 = vmatmul.mubr.msk.f32.vlgmr.msra.gmra.mxu0 %vm307_vm0, %v1528_v9 }
 0xb54   : > { %v1598_v14 = vpop.f32.mrf.mxu0 }
 0xb55   : > { %v1599_v16 = vadd.f32 %v1598_v14, %v290_v12 }
 0xb56   : > { %v1932_v19 = vpop.f32.mrf.mxu0 }
 0xb57   : > { %v1602_v23 = vmax.f32 %v1599_v16, 0.0 }
 0xb59   : > { %1938 = vmatmul.mubr.msk.f32.vlgmr.msra.gmra.mxu1 %vm1603_vm14, %v1602_v23 }
 0xc19   : > { %v1673_v26 = vpop.f32.mrf.mxu1 }
 0xc1a   : > { %v1674_v27 = vadd.f32 %v1673_v26, %v291_v25 }
 0xc1b   : > { %v1939_v28 = vpop.f32.mrf.mxu1 }
 0xc1c   : > { %v1677_v29 = vadd.f32 %v1674_v27, %v1528_v9 }
 0xc1e   : > { %v1678_v4 = vsel %vm307_vm0, %v1677_v29, 0.0 }
 0xc1f   : > { %1679 = vadd.xlane.f32.xlu0 %v1678_v4 }
 0xca8   : > { %v1680_v32 = vpop.xlane.xlu0 %1679 }
 0xca9   : > { %v1681_v33 = vmul.f32 0.020833334, %v1680_v32 }
 0xcab   : > { %v1682_v24 = vsub.f32 %v1677_v29, %v1681_v33 }
 0xcad   : > { %v1683_v35 = vmul.f32 %v1682_v24, %v1682_v24 }
 0xcaf   : > { %v1684_v36 = vsel %vm307_vm0, %v1683_v35, 0.0 }
 0xcb0   : > { %1685 = vadd.xlane.f32.xlu1 %v1684_v36 }
 0xd39   : > { %v1686_v37 = vpop.xlane.xlu1 %1685 }
 0xd3a   : > { %v1687_v38 = vmul.f32 0.020833334, %v1686_v37 }
 0xd3c   : > { %v1688_v39 = vadd.f32 1e-05, %v1687_v38 }
 0xd3e   : > { %2000 = vrsqrt.f32 %v1688_v39 }
 0xd4b   : > { %v2001_v40 = vpop.eup %2000 }
 0xd4c   : > { %v1690_v42 = vmul.f32 %v2001_v40, %v1682_v24 }
 0xd4e   : > { %v1691_v15 = vmul.f32 %v1690_v42, %v294_v41 }
 0xd50   : > { %v1692_v17 = vadd.f32 %v1691_v15, %v295_v43 }
 0xd52   : > { %v1694_v34 = vrot.slane %v1692_v17, 4 }
 0xd54   : > { %v1696_v44 = vadd.f32 %v1694_v34, %v1692_v17 }
 0xd56   : > { %1698 = vst.msk [vmem:[%s216_s20] sm:$0xf] %vm1697_vm15, %v1696_v44 }
 0xd57 PF: > { %s21_s23 = sadd.s32 1, %s2022_s23  }
 0xd58   : > { %p18_p9 = scmp.ge.s32.totalorder %s21_s23, 4  }
 0xd5a   :  { %20 = sbr.rel (!%p18_p9) target bundleno = 16 (0x10), region = 69 }

</bundles_post_ra>
